<compile_context>
chip_gen: v5e
topology: v5e:2x2
jax: 0.10.0
libtpu: 0.0.40
codegen_flags: <defaults>
</compile_context>

<pallas_src>
import jax
import jax.numpy as jnp
from jax.experimental import pallas as pl
from jax.experimental.pallas import tpu as pltpu


def _round_up(n, m):
    return ((n + m - 1) // m) * m


# ----------------------------------------------------------------------------
# Fused FFN kernel: RMSNorm -> Linear1 -> SwiGLU -> Linear2 for one row tile.
# ----------------------------------------------------------------------------
def _ffn_kernel(x_ref, gamma_ref, w1_ref, w2_ref, o_ref):
    dim = x_ref.shape[-1]
    dim_inner = w2_ref.shape[0]

    x = x_ref[...].astype(jnp.float32)                        # (tm, dim)

    # RMSNorm == F.normalize(x, dim=-1) * sqrt(dim) * gamma   (eps clamp like torch)
    sumsq = jnp.sum(x * x, axis=-1, keepdims=True)            # XLU cross-lane reduce
    inv = (dim ** 0.5) / jnp.maximum(jnp.sqrt(sumsq), 1e-12)
    normed = x * inv * gamma_ref[...].astype(jnp.float32)     # f32 on VPU

    # Linear1 (dim -> 2*dim_inner): bf16 MXU, f32 accumulation.
    h = jnp.dot(normed.astype(w1_ref.dtype), w1_ref[...],
                preferred_element_type=jnp.float32)           # (tm, 2*dim_inner)

    # SwiGLU: value * silu(gate), f32 on VPU/EUP.
    v = h[:, :dim_inner]
    g = h[:, dim_inner:]
    s = v * (g * jax.nn.sigmoid(g))

    # Linear2 (dim_inner -> padded dim): bf16 MXU, f32 accumulation.
    out = jnp.dot(s.astype(w2_ref.dtype), w2_ref[...],
                  preferred_element_type=jnp.float32)
    o_ref[...] = out.astype(o_ref.dtype)                      # lane-dense store


# ----------------------------------------------------------------------------
# Wrapper: tiling over rows, weight residency, lane padding, VMEM budget.
# ----------------------------------------------------------------------------
def feed_forward_forward(x, gamma, w1, w2, *, tm=256):
    *lead, dim = x.shape
    dim_inner = w1.shape[-1] // 2
    assert w1.shape == (dim, 2 * dim_inner)
    assert w2.shape[0] == dim_inner
    dim_out = w2.shape[-1]

    x2d = x.reshape(-1, dim)
    bt = x2d.shape[0]

    # Row tile: multiple of 8 sublanes, no larger than the (padded) row count.
    tm = max(8, _round_up(min(tm, bt), 8))
    bt_pad = _round_up(bt, tm)
    if bt_pad != bt:
        # Zero rows are safe: ||0|| clamps to eps, giving zero output rows.
        x2d = jnp.pad(x2d, ((0, bt_pad - bt), (0, 0)))

    # Lane-dense output: pad w2's output features to a multiple of 128 lanes.
    dim_out_pad = _round_up(dim_out, 128)
    w2p = w2 if dim_out_pad == dim_out else jnp.pad(
        w2, ((0, 0), (0, dim_out_pad - dim_out)))

    gamma2d = gamma.reshape(1, dim)
    grid = (bt_pad // tm,)

    # VMEM budget from the real tile sizes (double-buffered I/O tiles + resident
    # weights + f32 intermediate + headroom), capped at 48 MiB for v7x.
    xb = x2d.dtype.itemsize
    wb = w1.dtype.itemsize
    tiles = tm * dim * xb + tm * dim_out_pad * xb
    weights = dim * 2 * dim_inner * wb + dim_inner * dim_out_pad * wb + dim * 4
    inter = tm * 2 * dim_inner * 4
    vmem_limit = int(min(max(2 * tiles + 2 * weights + inter + (8 << 20),
                             16 << 20), 48 << 20))

    out2d = pl.pallas_call(
        _ffn_kernel,
        out_shape=jax.ShapeDtypeStruct((bt_pad, dim_out_pad), x.dtype),
        grid=grid,
        in_specs=[
            pl.BlockSpec((tm, dim), lambda i: (i, 0)),                 # row tile (pipelined)
            pl.BlockSpec((1, dim), lambda i: (0, 0)),                  # gamma (resident)
            pl.BlockSpec((dim, 2 * dim_inner), lambda i: (0, 0)),      # w1 (resident)
            pl.BlockSpec((dim_inner, dim_out_pad), lambda i: (0, 0)),  # w2 (resident)
        ],
        out_specs=pl.BlockSpec((tm, dim_out_pad), lambda i: (i, 0)),
        compiler_params=pltpu.CompilerParams(
            dimension_semantics=("parallel",),
            vmem_limit_bytes=vmem_limit,
        ),
    )(x2d, gamma2d, w1, w2p)

    out2d = out2d[:bt, :dim_out]
    return out2d.reshape(*lead, dim_out)


# ----------------------------------------------------------------------------
# Parameter construction (matches the PyTorch module: bias-free Linears, gamma).
# ----------------------------------------------------------------------------
def init_feed_forward(key, dim, mult=4, param_dtype=jnp.bfloat16):
    dim_inner = int(dim * mult * 2 / 3)
    k1, k2 = jax.random.split(key)
    b1 = 1.0 / (dim ** 0.5)
    b2 = 1.0 / (dim_inner ** 0.5)
    w1 = jax.random.uniform(k1, (dim, 2 * dim_inner), jnp.float32, -b1, b1
                            ).astype(param_dtype)
    w2 = jax.random.uniform(k2, (dim_inner, dim), jnp.float32, -b2, b2
                            ).astype(param_dtype)
    gamma = jnp.ones((dim,), jnp.float32)
    return gamma, w1, w2


# Pure-JAX reference with the identical mixed-precision policy (bf16 MXU, f32 acc).
def feed_forward_reference(x, gamma, w1, w2):
    dim = x.shape[-1]
    dim_inner = w2.shape[0]
    xf = x.astype(jnp.float32)
    norm = jnp.sqrt(jnp.sum(xf * xf, axis=-1, keepdims=True))
    normed = xf * ((dim ** 0.5) / jnp.maximum(norm, 1e-12)) * gamma.astype(jnp.float32)
    h = jnp.dot(normed.astype(w1.dtype), w1, preferred_element_type=jnp.float32)
    v, g = h[..., :dim_inner], h[..., dim_inner:]
    s = v * (g * jax.nn.sigmoid(g))
    out = jnp.dot(s.astype(w2.dtype), w2, preferred_element_type=jnp.float32)
    return out.astype(x.dtype)


if __name__ == "__main__":
    # Small shapes consistent with the module; dim=48, mult=4 -> dim_inner = 128.
    batch, seq, dim, mult = 2, 128, 48, 4
    key = jax.random.PRNGKey(0)
    kx, kp, kg = jax.random.split(key, 3)
    x = jax.random.normal(kx, (batch, seq, dim), jnp.float32)
    gamma, w1, w2 = init_feed_forward(kp, dim, mult)
    gamma = gamma + 0.1 * jax.random.normal(kg, gamma.shape, jnp.float32)

    out = feed_forward_forward(x, gamma, w1, w2, tm=128)
    out = jax.block_until_ready(out)
    assert out.shape == (batch, seq, dim), out.shape

    ref = feed_forward_reference(x, gamma, w1, w2)
    max_err = float(jnp.max(jnp.abs(out - ref)))
    assert jnp.allclose(out, ref, atol=2e-3, rtol=2e-3), f"mismatch, max err {max_err}"

    print("KERNEL_OK")
</pallas_src>

<mosaic_0001>
module attributes {stable_mosaic.version = 11 : i64} {
  func.func @_ffn_kernel(%arg0: i32, %arg1: memref<128x48xf32, #tpu.memory_space<vmem>>, %arg2: memref<1x48xf32, #tpu.memory_space<vmem>>, %arg3: memref<48x256xbf16, #tpu.memory_space<vmem>>, %arg4: memref<128x128xbf16, #tpu.memory_space<vmem>>, %arg5: memref<128x128xf32, #tpu.memory_space<vmem>>) attributes {dimension_semantics = [#tpu.dimension_semantics<parallel>], iteration_bounds = array<i64: 2>, scalar_prefetch = 0 : i64, scratch_operands = 0 : i64, tpu.core_type = #tpu.core_type<tc>, window_params = [{transform_indices = @transform_0, window_bounds = array<i64: 128, 48>}, {pipeline_mode = #tpu.pipeline_mode<synchronous>, transform_indices = @transform_1, window_bounds = array<i64: 1, 48>}, {pipeline_mode = #tpu.pipeline_mode<synchronous>, transform_indices = @transform_2, window_bounds = array<i64: 48, 256>}, {pipeline_mode = #tpu.pipeline_mode<synchronous>, transform_indices = @transform_3, window_bounds = array<i64: 128, 128>}, {transform_indices = @transform_4, window_bounds = array<i64: 128, 128>}]} {
    %c0 = arith.constant 0 : index
    %c0_0 = arith.constant 0 : index
    %0 = vector.load %arg1[%c0, %c0_0] : memref<128x48xf32, #tpu.memory_space<vmem>>, vector<128x48xf32>
    %1 = arith.mulf %0, %0 : vector<128x48xf32>
    %cst = arith.constant dense<0.000000e+00> : vector<128xf32>
    %2 = vector.multi_reduction <add>, %1, %cst [1] : vector<128x48xf32> to vector<128xf32>
    %3 = vector.shape_cast %2 : vector<128xf32> to vector<128x1xf32>
    %4 = math.sqrt %3 : vector<128x1xf32>
    %cst_1 = arith.constant 9.99999996E-13 : f32
    %5 = vector.broadcast %cst_1 : f32 to vector<128x1xf32>
    %6 = arith.maximumf %4, %5 : vector<128x1xf32>
    %cst_2 = arith.constant 6.92820311 : f32
    %7 = vector.broadcast %cst_2 : f32 to vector<128x1xf32>
    %8 = arith.divf %7, %6 : vector<128x1xf32>
    %9 = vector.broadcast %8 : vector<128x1xf32> to vector<128x48xf32>
    %10 = arith.mulf %0, %9 : vector<128x48xf32>
    %c0_3 = arith.constant 0 : index
    %c0_4 = arith.constant 0 : index
    %11 = vector.load %arg2[%c0_3, %c0_4] : memref<1x48xf32, #tpu.memory_space<vmem>>, vector<1x48xf32>
    %12 = vector.broadcast %11 : vector<1x48xf32> to vector<128x48xf32>
    %13 = arith.mulf %10, %12 : vector<128x48xf32>
    %14 = arith.truncf %13 : vector<128x48xf32> to vector<128x48xbf16>
    %c0_5 = arith.constant 0 : index
    %c0_6 = arith.constant 0 : index
    %15 = vector.load %arg3[%c0_5, %c0_6] : memref<48x256xbf16, #tpu.memory_space<vmem>>, vector<48x256xbf16>
    %cst_7 = arith.constant dense<0.000000e+00> : vector<128x256xf32>
    %16 = tpu.matmul %14, %15, %cst_7 {dimension_numbers = #tpu.dot_dimension_numbers<[1], [0], [0], [1], [0, 0, 1, 1], [], []>} : vector<128x48xbf16>, vector<48x256xbf16>, vector<128x256xf32> -> vector<128x256xf32>
    %17 = vector.extract_strided_slice %16 {offsets = [0, 0], sizes = [128, 128], strides = [1, 1]} : vector<128x256xf32> to vector<128x128xf32>
    %18 = vector.extract_strided_slice %16 {offsets = [0, 128], sizes = [128, 128], strides = [1, 1]} : vector<128x256xf32> to vector<128x128xf32>
    %19 = arith.negf %18 : vector<128x128xf32>
    %20 = math.exp %19 : vector<128x128xf32>
    %cst_8 = arith.constant 1.000000e+00 : f32
    %21 = vector.broadcast %cst_8 : f32 to vector<128x128xf32>
    %22 = arith.addf %21, %20 : vector<128x128xf32>
    %23 = arith.divf %21, %22 : vector<128x128xf32>
    %24 = arith.mulf %18, %23 : vector<128x128xf32>
    %25 = arith.mulf %17, %24 : vector<128x128xf32>
    %26 = arith.truncf %25 : vector<128x128xf32> to vector<128x128xbf16>
    %c0_9 = arith.constant 0 : index
    %c0_10 = arith.constant 0 : index
    %27 = vector.load %arg4[%c0_9, %c0_10] : memref<128x128xbf16, #tpu.memory_space<vmem>>, vector<128x128xbf16>
    %cst_11 = arith.constant dense<0.000000e+00> : vector<128x128xf32>
    %28 = tpu.matmul %26, %27, %cst_11 {dimension_numbers = #tpu.dot_dimension_numbers<[1], [0], [0], [1], [0, 0, 1, 1], [], []>} : vector<128x128xbf16>, vector<128x128xbf16>, vector<128x128xf32> -> vector<128x128xf32>
    %c0_12 = arith.constant 0 : index
    %c0_13 = arith.constant 0 : index
    %29 = vector.load %arg5[%c0_12, %c0_13] : memref<128x128xf32, #tpu.memory_space<vmem>>, vector<128x128xf32>
    tpu.vector_store %arg5[%c0_12, %c0_13], %28 {strides = array<i32>} : memref<128x128xf32, #tpu.memory_space<vmem>>, vector<128x128xf32>,
    return
  }
  func.func @transform_0(%arg0: i32) -> (i32, i32) {
    %c0_i32 = arith.constant 0 : i32
    %c0_i32_0 = arith.constant 0 : i32
    return %arg0, %c0_i32 : i32, i32
  }
  func.func @transform_1(%arg0: i32) -> (i32, i32) {
    %c0_i32 = arith.constant 0 : i32
    %c0_i32_0 = arith.constant 0 : i32
    %c0_i32_1 = arith.constant 0 : i32
    return %c0_i32, %c0_i32_0 : i32, i32
  }
  func.func @transform_2(%arg0: i32) -> (i32, i32) {
    %c0_i32 = arith.constant 0 : i32
    %c0_i32_0 = arith.constant 0 : i32
    %c0_i32_1 = arith.constant 0 : i32
    return %c0_i32, %c0_i32_0 : i32, i32
  }
  func.func @transform_3(%arg0: i32) -> (i32, i32) {
    %c0_i32 = arith.constant 0 : i32
    %c0_i32_0 = arith.constant 0 : i32
    %c0_i32_1 = arith.constant 0 : i32
    return %c0_i32, %c0_i32_0 : i32, i32
  }
  func.func @transform_4(%arg0: i32) -> (i32, i32) {
    %c0_i32 = arith.constant 0 : i32
    %c0_i32_0 = arith.constant 0 : i32
    return %arg0, %c0_i32 : i32, i32
  }
}

</mosaic_0001>

<bundles_post_ra>
// kernel: tpu_custom_call.1
= control target key start
LH: loop header
LB: loop body
LE: loop exit
PB: predicated region body
PF: predicated region fallthrough
CT: control target
= control target key end

     0   :  { %9 = vsyncpa [#allocation3], 0  ;;  %s2770_s0 = inlined_call_operand.vmem [shape: f32[256,48], index: 0, kind: input, shape index: {}]   ;;  %s2771_s1 = inlined_call_operand.vmem [shape: f32[1,48], index: 1, kind: input, shape index: {}]   ;;  %s2772_s2 = inlined_call_operand.vmem [shape: bf16[48,256], index: 2, kind: input, shape index: {}]   ;;  %s2773_s3 = inlined_call_operand.vmem [shape: bf16[128,128], index: 3, kind: input, shape index: {}]   ;;  %s2774_s4 = inlined_call_operand.hbm [shape: f32[256,128], index: 4, kind: output, shape index: {}]  }
   0x1   :  { %11 = vsyncpa [#allocation3 + $0x1], 0  ;;  %s1872_s15 = smov 0   ;;  %s1874_s16 = smov 0  }
   0x2   :  { %s1876_s17 = smov 0   ;;  %s1878_s18 = smov 0  }
   0x3 LB: > { %s1893_s19 = sadd.s32 4294967295, %s1843_s18   ;;  %s1482_s20 = sadd.s32 4294967294, %s1843_s18   ;;  %s1843_s18 = sphi %s1878_s18, %s2804_s18   ;;  %s1839_s17 = sphi %s1876_s17, %s2803_s17   ;;  %s1835_s16 = sphi %s1874_s16, %s2802_s16   ;;  %s1831_s15 = sphi %s1872_s15, %s2801_s15  }
   0x4   : > { %s1897_s21 = sadd.s32 1, %s1843_s18   ;;  %s113_s22 = sadd.s32 1, %s1839_s17 }
   0x5   : > { %s110_s23 = ssub.s32 %s1843_s18, %s1897_s21  ;;  %p123_p0 = scmp.ne.s32.totalorder %s1839_s17, %s1835_s16 }
   0x6   : > { %p111_p1 = scmp.eq.s32.totalorder %s110_s23, 0  ;;  %p124_p2 = scmp.eq.s32.totalorder %s1893_s19, 1 }
   0x7   : > { %p129_p3 = scmp.ne.s32.totalorder %s1835_s16, %s1831_s15  ;;  %p130_p4 = scmp.eq.s32.totalorder %s1482_s20, 1 }
   0x8   : > { %s1908_s24 = scalar_select %p111_p1, %s1839_s17, %s113_s22  }
   0x9   : > { %p1910_p5 = por %p124_p2, %p123_p0  ;;  %p1914_p6 = por %p130_p4, %p129_p3 }
   0xa   : > { %p1485_p7 = scmp.ge.s32.totalorder %s1843_s18, 1  ;;  %p166_p8 = scmp.lt.s32.totalorder %s1843_s18, 3 }
   0xc   : > { %p167_p9 = pnand %p1485_p7, %p166_p8 }
   0xd   : > { %s1487_s27 = sshll.u32 (!%p167_p9), %s1893_s19, 4  ;;  %s189_s20 = sand.u32 (!%p167_p9), 1, %s1835_s16  }
   0xe   : > { %170 = sbr.rel (%p167_p9) target bundleno = 623 (0x26f), region = 36  ;;  %p193_p10 = scmp.lt.s32.totalorder (!%p167_p9), %s1487_s27, 31 }
   0xf   : > { %s1486_s22 = sshll.u32 (!%p167_p9), %s189_s20, 7  ;;  %s1405_s7 = scalar_lea.sflag (!%p167_p9), [#allocation3], %s189_s20 }
  0x10   : > { %s2718_s23 = scalar_lea.vmem (!%p167_p9), [#allocation2], %s1486_s22  ;;  %s1801_s11 = scalar_lea.hbm (!%p167_p9), %s2774_s4, 256 }
  0x11   : > { %s1417_s30 = sshll.u32 (!%p167_p9), %s2718_s23, 4  ;;  %s1418_s30 = int_to_ptr.vmem [resolvable:$true] %s1417_s30 }
  0x13   : > { %s2806_s27 = smov (!%p193_p10, %s1487_s27), 31  ;;  %vm232_vm0 = vcmask 392192   ;;  %v1507_v63 = vld [vmem:[%s2772_s2 + $0x20] sm:$0xf] }
  0x14   : > { %s1488_s28 = sshll.u32 %s2806_s27, 3 }
  0x15   : > { %s1924_s5 = scalar_lea.vmem %s2770_s0, %s1488_s28 }
  0x16   : > { %v1927_v0 = vld [vmem:[%s1924_s5 + $0x20] sm:$0xff]  ;;  %v1930_v1 = vld [vmem:[%s1924_s5 + $0x10] sm:$0xff]  ;;  %v1942_v6 = vld [vmem:[%s1924_s5 + $0x28] sm:$0xff] }
  0x17   : > { %v1933_v2 = vld [vmem:[%s1924_s5] sm:$0xff]  ;;  %v220_v3 = vmul.f32 %v1927_v0, %v1927_v0  ;;  %v218_v4 = vmul.f32 %v1930_v1, %v1930_v1  ;;  %v1945_v7 = vld [vmem:[%s1924_s5 + $0x18] sm:$0xff]  ;;  %v1951_v11 = vld [vmem:[%s1924_s5 + $0x8] sm:$0xff]  ;;  %v221_v12 = vmul.f32 %v1942_v6, %v1942_v6 }
  0x18   : > { %v216_v5 = vmul.f32 %v1933_v2, %v1933_v2  ;;  %v219_v13 = vmul.f32 %v1945_v7, %v1945_v7  ;;  %v217_v14 = vmul.f32 %v1951_v11, %v1951_v11  ;;  %v1963_v18 = vld [vmem:[%s1924_s5 + $0x38] sm:$0xff]  ;;  %v1966_v19 = vld [vmem:[%s1924_s5 + $0x40] sm:$0xff]  ;;  %v1969_v20 = vld [vmem:[%s1924_s5 + $0x30] sm:$0xff] }
  0x19   : > { %v245_v8 = vsel %vm232_vm0, %v220_v3, 0.0  ;;  %v239_v9 = vsel %vm232_vm0, %v218_v4, 0.0  ;;  %v248_v15 = vsel %vm232_vm0, %v221_v12, 0.0  ;;  %v223_v21 = vmul.f32 %v1963_v18, %v1963_v18  ;;  %v211_v27 = vld [vmem:[%s1924_s5 + $0x58] sm:$0xff]  ;;  %v210_v28 = vld [vmem:[%s1924_s5 + $0x50] sm:$0xff]  ;;  %v1983_v29 = vld [vmem:[%s1924_s5 + $0x48] sm:$0xff] }
  0x1a   : > { %v233_v10 = vsel %vm232_vm0, %v216_v5, 0.0  ;;  %246 = vadd.xlane.f32.xlu2 %v245_v8  ;;  %240 = vadd.xlane.f32.xlu1 %v239_v9  ;;  %v242_v16 = vsel %vm232_vm0, %v219_v13, 0.0  ;;  %v236_v17 = vsel %vm232_vm0, %v217_v14, 0.0  ;;  %v224_v22 = vmul.f32 %v1966_v19, %v1966_v19  ;;  %v213_v36 = vld [vmem:[%s1924_s5 + $0x68] sm:$0xff]  ;;  %v214_v37 = vld [vmem:[%s1924_s5 + $0x70] sm:$0xff]  ;;  %v212_v38 = vld [vmem:[%s1924_s5 + $0x60] sm:$0xff] }
  0x1b   : > { %234 = vadd.xlane.f32.xlu0 %v233_v10  ;;  %v222_v23 = vmul.f32 %v1969_v20, %v1969_v20  ;;  %v254_v24 = vsel %vm232_vm0, %v223_v21, 0.0  ;;  %v227_v30 = vmul.f32 %v211_v27, %v211_v27  ;;  %v226_v31 = vmul.f32 %v210_v28, %v210_v28  ;;  %v215_v45 = vld [vmem:[%s1924_s5 + $0x78] sm:$0xff]  ;;  %v1587_v3 = vld [vmem:[%s2772_s2 + $0x24] sm:$0xf0] }
  0x1c   : > { %v257_v25 = vsel %vm232_vm0, %v224_v22, 0.0  ;;  %v225_v32 = vmul.f32 %v1983_v29, %v1983_v29  ;;  %v229_v39 = vmul.f32 %v213_v36, %v213_v36  ;;  %v230_v40 = vmul.f32 %v214_v37, %v214_v37 }
  0x1d   : > { %v251_v26 = vsel %vm232_vm0, %v222_v23, 0.0  ;;  %v266_v33 = vsel %vm232_vm0, %v227_v30, 0.0  ;;  %v263_v34 = vsel %vm232_vm0, %v226_v31, 0.0  ;;  %v228_v41 = vmul.f32 %v212_v38, %v212_v38 }
  0x1e   : > { %v260_v35 = vsel %vm232_vm0, %v225_v32, 0.0  ;;  %v272_v42 = vsel %vm232_vm0, %v229_v39, 0.0  ;;  %v275_v43 = vsel %vm232_vm0, %v230_v40, 0.0  ;;  %v231_v46 = vmul.f32 %v215_v45, %v215_v45 }
  0x1f   : > { %v269_v44 = vsel %vm232_vm0, %v228_v41, 0.0  ;;  %v1508_v8 = vor.u32 %v1587_v3, %v1507_v63  ;;  %v1584_v3 = vld [vmem:[%s2772_s2 + $0x14] sm:$0xf] }
  0x20   : > { %v278_v47 = vsel %vm232_vm0, %v231_v46, 0.0 }
  0x21   : > { %838 = vmatpush.bf16.msra.mxu0 %v1508_v8 }
  0x22   : > { %249 = vadd.xlane.f32.xlu2 %v248_v15  ;;  %243 = vadd.xlane.f32.xlu1 %v242_v16 }
  0x23   : > { %237 = vadd.xlane.f32.xlu0 %v236_v17 }
  0x2a   : > { %255 = vadd.xlane.f32.xlu1 %v254_v24  ;;  %258 = vadd.xlane.f32.xlu2 %v257_v25 }
  0x2b   : > { %252 = vadd.xlane.f32.xlu0 %v251_v26 }
  0x32   : > { %267 = vadd.xlane.f32.xlu2 %v266_v33  ;;  %264 = vadd.xlane.f32.xlu1 %v263_v34 }
  0x33   : > { %261 = vadd.xlane.f32.xlu0 %v260_v35 }
  0x3a   : > { %273 = vadd.xlane.f32.xlu1 %v272_v42  ;;  %276 = vadd.xlane.f32.xlu2 %v275_v43 }
  0x3b   : > { %270 = vadd.xlane.f32.xlu0 %v269_v44 }
  0x43   : > { %279 = vadd.xlane.f32.xlu0 %v278_v47 }
  0x8d   : > { %v1998_v48 = vpop.xlane.xlu2 %246  ;;  %v2000_v49 = vpop.xlane.xlu1 %240 }
  0x8e   : > { %v235_v50 = vpop.xlane.xlu0 %234  ;;  %1647 = vrsqrt.f32 %v2000_v49  ;;  %vm336_vm3 = vcmp.eq.f32.partialorder %v1998_v48, inf  ;;  %vm312_vm4 = vcmp.eq.f32.partialorder %v2000_v49, inf  ;;  %vm314_vm7 = vcmp.eq.f32.partialorder %v2000_v49, 0.0 }
  0x8f   : > { %1649 = vrsqrt.f32 %v235_v50  ;;  %vm288_vm1 = vcmp.eq.f32.partialorder %v235_v50, inf  ;;  %v291_v30 = vand.u32 2147483648, %v235_v50  ;;  %vm290_vm2 = vcmp.eq.f32.partialorder %v235_v50, 0.0 }
  0x90   : > { %1651 = vrsqrt.f32 %v1998_v48  ;;  %vm338_vm8 = vcmp.eq.f32.partialorder %v1998_v48, 0.0 }
  0x94   : > { %v1648_v51 = vpop.eup %1647 }
  0x95   : > { %v2004_v52 = vpop.xlane.xlu1 %243  ;;  %v1650_v53 = vpop.eup %1649  ;;  %v306_v55 = vmul.f32 %v1648_v51, %v2000_v49 }
  0x96   : > { %v2006_v54 = vpop.xlane.xlu0 %237  ;;  %v282_v56 = vmul.f32 %v1650_v53, %v235_v50  ;;  %v2009_v57 = vpop.xlane.xlu2 %249  ;;  %1653 = vrsqrt.f32 %v2004_v52  ;;  %vm324_vm9 = vcmp.eq.f32.partialorder %v2004_v52, inf  ;;  %vm326_vm12 = vcmp.eq.f32.partialorder %v2004_v52, 0.0 }
  0x97   : > { %v1652_v58 = vpop.eup %1651  ;;  %1655 = vrsqrt.f32 %v2006_v54  ;;  %v307_v60 = vmul.f32 %v1648_v51, %v306_v55  ;;  %vm300_vm5 = vcmp.eq.f32.partialorder %v2006_v54, inf  ;;  %vm302_vm6 = vcmp.eq.f32.partialorder %v2006_v54, 0.0  ;;  %v1586_v55 = vld [vmem:[%s2772_s2 + $0x24] sm:$0xf] }
  0x98   : > { %v283_v59 = vmul.f32 %v1650_v53, %v282_v56  ;;  %1657 = vrsqrt.f32 %v2009_v57  ;;  %v330_v62 = vmul.f32 %v1652_v58, %v1998_v48  ;;  %v303_v46 = vand.u32 2147483648, %v2006_v54  ;;  %v1509_v56 = vld [vmem:[%s2772_s2 + $0x28] sm:$0xf0] }
  0x99   : > { %v308_v12 = vmul.f32 0.5, %v307_v60  ;;  %vm348_vm10 = vcmp.eq.f32.partialorder %v2009_v57, inf  ;;  %vm350_vm11 = vcmp.eq.f32.partialorder %v2009_v57, 0.0 }
  0x9a   : > { %v284_v61 = vmul.f32 0.5, %v283_v59  ;;  %v331_v15 = vmul.f32 %v1652_v58, %v330_v62  ;;  %v315_v59 = vand.u32 2147483648, %v2000_v49 }
  0x9b   : > { %v309_v24 = vsub.f32 1.5, %v308_v12  ;;  %v1491_v12 = vld [vmem:[%s2772_s2] sm:$0xf] }
  0x9c   : > { %v1654_v4 = vpop.eup %1653  ;;  %v285_v5 = vsub.f32 1.5, %v284_v61  ;;  %v332_v28 = vmul.f32 0.5, %v331_v15  ;;  %v1585_v61 = vld [vmem:[%s2772_s2 + $0x14] sm:$0xf0] }
  0x9d   : > { %v318_v9 = vmul.f32 %v1654_v4, %v2004_v52  ;;  %v1656_v10 = vpop.eup %1655  ;;  %v2029_v27 = vpop.xlane.xlu1 %255  ;;  %v310_v35 = vmul.f32 %v1648_v51, %v309_v24 }
  0x9e   : > { %v286_v13 = vmul.f32 %v1650_v53, %v285_v5  ;;  %v2022_v14 = vpop.eup %1657  ;;  %v294_v16 = vmul.f32 %v1656_v10, %v2006_v54  ;;  %v2025_v17 = vpop.xlane.xlu0 %252  ;;  %v333_v37 = vsub.f32 1.5, %v332_v28  ;;  %v1582_v28 = vld [vmem:[%s2772_s2 + $0x4] sm:$0xf] }
  0x9f   : > { %v319_v22 = vmul.f32 %v1654_v4, %v318_v9  ;;  %v342_v26 = vmul.f32 %v2022_v14, %v2009_v57  ;;  %1659 = vrsqrt.f32 %v2025_v17  ;;  %v2038_v42 = vpop.xlane.xlu2 %258  ;;  %v311_v44 = vmul.f32 %v310_v35, %v2000_v49 }
  0xa0   : > { %v287_v21 = vmul.f32 %v286_v13, %v235_v50  ;;  %v295_v23 = vmul.f32 %v1656_v10, %v294_v16  ;;  %1661 = vrsqrt.f32 %v2029_v27  ;;  %v1583_v13 = vld [vmem:[%s2772_s2 + $0x4] sm:$0xf0] }
  0xa1   : > { %v320_v32 = vmul.f32 0.5, %v319_v22  ;;  %v343_v36 = vmul.f32 %v2022_v14, %v342_v26  ;;  %1663 = vrsqrt.f32 %v2038_v42  ;;  %v313_v5 = vsel %vm312_vm4, %v2000_v49, %v311_v44 }
  0xa2   : > { %v289_v25 = vsel %vm288_vm1, %v235_v50, %v287_v21  ;;  %v296_v31 = vmul.f32 0.5, %v295_v23  ;;  %v334_v50 = vmul.f32 %v1652_v58, %v333_v37  ;;  %v1492_v26 = vor.u32 %v1583_v13, %v1491_v12 }
  0xa3   : > { %v292_v33 = vsel %vm290_vm2, %v291_v30, %v289_v25  ;;  %v321_v41 = vsub.f32 1.5, %v320_v32  ;;  %v344_v45 = vmul.f32 0.5, %v343_v36  ;;  %v316_v25 = vsel %vm314_vm7, %v315_v59, %v313_v5  ;;  %v1493_v30 = vld [vmem:[%s2772_s2 + $0x8] sm:$0xf0] }
  0xa4   : > { %v297_v34 = vsub.f32 1.5, %v296_v31  ;;  %v2036_v40 = vmax.f32 %v292_v33, 1e-12  ;;  %v335_v15 = vmul.f32 %v334_v50, %v1998_v48  ;;  %v2110_v36 = vmax.f32 %v316_v25, 1e-12 }
  0xa5   : > { %v2034_v39 = vpop.eup %1659  ;;  %v322_v58 = vmul.f32 %v1654_v4, %v321_v41  ;;  %v1501_v4 = vld [vmem:[%s2772_s2 + $0x18] sm:$0xf0]  ;;  %v345_v8 = vsub.f32 1.5, %v344_v45  ;;  %v351_v50 = vand.u32 2147483648, %v2009_v57  ;;  %vm372_vm4 = vcmp.eq.f32.partialorder %v2029_v27, inf }
  0xa6   : > { %v298_v38 = vmul.f32 %v1656_v10, %v297_v34  ;;  %v2047_v47 = vpop.eup %1661  ;;  %v354_v53 = vmul.f32 %v2034_v39, %v2025_v17  ;;  %1665 = vrcp.f32 %v2036_v40  ;;  %v2069_v63 = vpop.xlane.xlu0 %261  ;;  %v1512_v10 = vor.u32 %v1586_v55, %v1509_v56 }
  0xa7   : > { %v366_v9 = vmul.f32 %v2047_v47, %v2029_v27  ;;  %v323_v22 = vmul.f32 %v322_v58, %v2004_v52  ;;  %v1504_v23 = vor.u32 %v1584_v3, %v1501_v4  ;;  %v2094_v24 = vpop.eup %1663  ;;  %v346_v31 = vmul.f32 %v2022_v14, %v345_v8 }
  0xa8   : > { %v299_v43 = vmul.f32 %v298_v38, %v2006_v54  ;;  %v355_v16 = vmul.f32 %v2034_v39, %v354_v53  ;;  %887 = vmatpush.bf16.msra.mxu1 %v1512_v10  ;;  %v337_v33 = vsel %vm336_vm3, %v1998_v48, %v335_v15  ;;  %v339_v34 = vand.u32 2147483648, %v1998_v48 }
  0xa9   : > { %v367_v32 = vmul.f32 %v2047_v47, %v366_v9  ;;  %v325_v37 = vsel %vm324_vm9, %v2004_v52, %v323_v22  ;;  %v378_v38 = vmul.f32 %v2094_v24, %v2038_v42  ;;  %v1496_v14 = vor.u32 %v1582_v28, %v1493_v30  ;;  %v2143_v9 = vpop.xlane.xlu1 %264 }
  0xaa   : > { %v301_v51 = vsel %vm300_vm5, %v2006_v54, %v299_v43  ;;  %v1499_v54 = vld [vmem:[%s2772_s2 + $0x10] sm:$0xf]  ;;  %v356_v35 = vmul.f32 0.5, %v355_v16  ;;  %v327_v43 = vand.u32 2147483648, %v2004_v52  ;;  %v340_v53 = vsel %vm338_vm8, %v339_v34, %v337_v33 }
  0xab   : > { %v304_v60 = vsel %vm302_vm6, %v303_v46, %v301_v51  ;;  %v1500_v21 = vor.u32 %v1585_v61, %v1499_v54  ;;  %v347_v46 = vmul.f32 %v346_v31, %v2009_v57  ;;  %v368_v51 = vmul.f32 0.5, %v367_v32 }
  0xac   : > { %v2067_v62 = vmax.f32 %v304_v60, 1e-12  ;;  %v1666_v49 = vpop.eup %1665  ;;  %888 = vmatpush.bf16.msra.mxu1 %v1504_v23  ;;  %v328_v55 = vsel %vm326_vm12, %v327_v43, %v325_v37  ;;  %v357_v56 = vsub.f32 1.5, %v356_v35  ;;  %v379_v58 = vmul.f32 %v2094_v24, %v378_v38  ;;  %v2130_v60 = vpop.xlane.xlu2 %267 }
  0xad   : > { %839 = vmatpush.bf16.msra.mxu0 %v1500_v21  ;;  %v490_v44 = vmul.f32 %v1666_v49, %v2036_v40  ;;  %v500_v54 = vand.u32 2147483648, %v2036_v40  ;;  %vm495_vm13 = vweird.f32 %v1666_v49  ;;  %v498_v3 = vand.u32 2147483647, %v2036_v40 }
  0xae   : > { %1667 = vrcp.f32 %v2067_v62  ;;  %v349_v4 = vsel %vm348_vm10, %v2009_v57, %v347_v46  ;;  %v2141_v5 = vmax.f32 %v328_v55, 1e-12  ;;  %v369_v8 = vsub.f32 1.5, %v368_v51 }
  0xaf   : > { %1669 = vrsqrt.f32 %v2069_v63  ;;  %v491_v59 = vsub.f32 1.0, %v490_v44  ;;  %v358_v12 = vmul.f32 %v2034_v39, %v357_v56  ;;  %vm494_vm14 = vweird.f32 %v2036_v40 }
  0xb0   : > { %1671 = vrcp.f32 %v2110_v36  ;;  %889 = vmatpush.bf16.msra.mxu1 %v1496_v14  ;;  %v380_v15 = vmul.f32 0.5, %v379_v58  ;;  %vm496_vm15 = vmor %vm494_vm14, %vm495_vm13  ;;  %v501_v16 = vor.u32 1.1754944e-38, %v500_v54  ;;  %vm499_vm2 = vcmp.eq.f32.partialorder %v498_v3, 8.507059e+37 }
  0xb1   : > { %840 = vmatpush.bf16.msra.mxu0 %v1492_v26  ;;  %v492_v48 = vmul.f32 %v1666_v49, %v491_v59  ;;  %1673 = vrsqrt.f32 %v2130_v60  ;;  %vm509_vm3 = vweird.f32 %v2067_v62  ;;  %v513_v40 = vand.u32 2147483647, %v2067_v62 }
  0xb2   : > { %1675 = vrsqrt.f32 %v2143_v9  ;;  %v2157_v28 = vmax.f32 %v340_v53, 1e-12  ;;  %v352_v30 = vsel %vm350_vm11, %v351_v50, %v349_v4  ;;  %v370_v32 = vmul.f32 %v2047_v47, %v369_v8  ;;  %v2190_v53 = vld [vmem:[%s2771_s1] ss:$0 sm:$0xff] }
  0xb3   : > { %v493_v13 = vadd.f32 %v1666_v49, %v492_v48  ;;  %v381_v33 = vsub.f32 1.5, %v380_v15  ;;  %1677 = vrcp.f32 %v2141_v5  ;;  %vm374_vm6 = vcmp.eq.f32.partialorder %v2029_v27, 0.0  ;;  %v2207_v48 = vpop.xlane.xlu1 %273 }
  0xb4   : > { %v2115_v41 = vpop.eup %1667  ;;  %v2175_v14 = vmax.f32 %v352_v30, 1e-12  ;;  %v359_v47 = vmul.f32 %v358_v12, %v2025_v17  ;;  %vm514_vm7 = vcmp.eq.f32.partialorder %v513_v40, 8.507059e+37  ;;  %1679 = vrcp.f32 %v2157_v28 }
  0xb5   : > { %v2121_v45 = vpop.eup %1669  ;;  %v505_v61 = vmul.f32 %v2115_v41, %v2067_v62  ;;  %vm510_vm1 = vweird.f32 %v2115_v41  ;;  %v497_v23 = vsel %vm496_vm15, %v1666_v49, %v493_v13  ;;  %v515_v49 = vand.u32 2147483648, %v2067_v62 }
  0xb6   : > { %v390_v52 = vmul.f32 %v2121_v45, %v2069_v63  ;;  %v2152_v25 = vpop.eup %1671  ;;  %v502_v39 = vsel %vm499_vm2, %v501_v16, %v497_v23  ;;  %vm2162_vm5 = vmor %vm509_vm3, %vm510_vm1  ;;  %v375_v62 = vand.u32 2147483648, %v2029_v27  ;;  %vm360_vm8 = vcmp.eq.f32.partialorder %v2025_v17, inf }
  0xb7   : > { %v506_v10 = vsub.f32 1.0, %v505_v61  ;;  %v503_v34 = vmul.f32 6.928203, %v502_v39  ;;  %v2171_v37 = vpop.eup %1673  ;;  %v516_v38 = vor.u32 1.1754944e-38, %v515_v49  ;;  %vm362_vm9 = vcmp.eq.f32.partialorder %v2025_v17, 0.0 }
  0xb8   : > { %v391_v22 = vmul.f32 %v2121_v45, %v390_v52  ;;  %v2179_v43 = vpop.eup %1675  ;;  %v371_v44 = vmul.f32 %v370_v32, %v2029_v27  ;;  %v382_v46 = vmul.f32 %v2094_v24, %v381_v33  ;;  %v363_v55 = vand.u32 2147483648, %v2025_v17 }
  0xb9   : > { %v507_v21 = vmul.f32 %v2115_v41, %v506_v10  ;;  %v729_v51 = vmul.f32 %v503_v34, %v1933_v2  ;;  %vm384_vm10 = vcmp.eq.f32.partialorder %v2038_v42, inf  ;;  %v414_v59 = vmul.f32 %v2171_v37, %v2130_v60  ;;  %v2200_v54 = vpop.eup %1677  ;;  %v2244_v34 = vpop.xlane.xlu0 %270 }
  0xba   : > { %v392_v57 = vmul.f32 0.5, %v391_v22  ;;  %1681 = vrcp.f32 %v2175_v14  ;;  %v361_v24 = vsel %vm360_vm8, %v2025_v17, %v359_v47  ;;  %v387_v58 = vand.u32 2147483648, %v2038_v42  ;;  %v2217_v12 = vpop.eup %1679 }
  0xbb   : > { %v508_v26 = vadd.f32 %v2115_v41, %v507_v21  ;;  %vm386_vm11 = vcmp.eq.f32.partialorder %v2038_v42, 0.0  ;;  %vm396_vm12 = vcmp.eq.f32.partialorder %v2069_v63, inf  ;;  %v399_v61 = vand.u32 2147483648, %v2069_v63 }
  0xbc   : > { %v393_v56 = vsub.f32 1.5, %v392_v57  ;;  %v402_v52 = vmul.f32 %v2179_v43, %v2143_v9  ;;  %v520_v3 = vmul.f32 %v2152_v25, %v2110_v36  ;;  %v383_v4 = vmul.f32 %v382_v46, %v2038_v42 }
  0xbd   : > { %v512_v35 = vsel %vm2162_vm5, %v2115_v41, %v508_v26  ;;  %v749_v8 = vmul.f32 %v2190_v53, %v729_v51  ;;  %v364_v13 = vsel %vm362_vm9, %v363_v55, %v361_v24  ;;  %v415_v16 = vmul.f32 %v2171_v37, %v414_v59 }
  0xbe   : > { %v517_v41 = vsel %vm514_vm7, %v516_v38, %v512_v35  ;;  %v394_v15 = vmul.f32 %v2121_v45, %v393_v56  ;;  %v521_v21 = vsub.f32 1.0, %v520_v3  ;;  %vm398_vm13 = vcmp.eq.f32.partialorder %v2069_v63, 0.0 }
  0xbf   : > { %v518_v50 = vmul.f32 6.928203, %v517_v41  ;;  %1683 = vrsqrt.f32 %v2207_v48  ;;  %v530_v23 = vand.u32 2147483648, %v2110_v36  ;;  %v535_v39 = vmul.f32 %v2200_v54, %v2141_v5 }
  0xc0   : > { %v403_v26 = vmul.f32 %v2179_v43, %v402_v52  ;;  %v522_v17 = vmul.f32 %v2152_v25, %v521_v21  ;;  %vm525_vm14 = vweird.f32 %v2152_v25  ;;  %v528_v45 = vand.u32 2147483647, %v2110_v36  ;;  %v2232_v40 = vpop.eup %1681 }
  0xc1   : > { %v730_v2 = vmul.f32 %v518_v50, %v1951_v11  ;;  %v373_v11 = vsel %vm372_vm4, %v2029_v27, %v371_v44  ;;  %v2236_v31 = vmax.f32 %v364_v13, 1e-12  ;;  %v385_v49 = vsel %vm384_vm10, %v2038_v42, %v383_v4 }
  0xc2   : > { %v376_v30 = vsel %vm374_vm6, %v375_v62, %v373_v11  ;;  %v536_v32 = vsub.f32 1.0, %v535_v39  ;;  %v395_v33 = vmul.f32 %v394_v15, %v2069_v63  ;;  %v523_v35 = vadd.f32 %v2152_v25, %v522_v17 }
  0xc3   : > { %v750_v10 = vmul.f32 %v2190_v53, %v730_v2  ;;  %vm524_vm15 = vweird.f32 %v2110_v36  ;;  %v545_v27 = vand.u32 2147483648, %v2141_v5  ;;  %v531_v57 = vor.u32 1.1754944e-38, %v530_v23 }
  0xc4   : > { %vm526_vm1 = vmor %vm524_vm15, %vm525_vm14  ;;  %v537_v38 = vmul.f32 %v2200_v54, %v536_v32  ;;  %vm540_vm2 = vweird.f32 %v2200_v54  ;;  %v543_v62 = vand.u32 2147483647, %v2141_v5  ;;  %v416_v47 = vmul.f32 0.5, %v415_v16 }
  0xc5   : > { %v765_v22 = vpack.c.bf16 %v750_v10, %v749_v8  ;;  %v404_v41 = vmul.f32 0.5, %v403_v26  ;;  %v527_v44 = vsel %vm526_vm1, %v2152_v25, %v523_v35  ;;  %vm529_vm3 = vcmp.eq.f32.partialorder %v528_v45, 8.507059e+37  ;;  %v2253_v46 = vpop.eup %1683  ;;  %v2318_v35 = vpop.xlane.xlu2 %276 }
  0xc6   : > { %1685 = vrsqrt.f32 %v2244_v34  ;;  %v532_v36 = vsel %vm529_vm3, %v531_v57, %v527_v44  ;;  %v538_v50 = vadd.f32 %v2200_v54, %v537_v38  ;;  %vm539_vm4 = vweird.f32 %v2141_v5 }
  0xc7   : > { %1513 = vmatmul.msk.bf16.vlgmr.msra.gmra.mxu0 %vm232_vm0, %v765_v22  ;;  %1521 = vmatmul.msk.bf16.vlgmr.msra.gmra.mxu1 %vm232_vm0, %v765_v22  ;;  %v2258_v51 = vmax.f32 %v376_v30, 1e-12  ;;  %v423_v55 = vand.u32 2147483648, %v2130_v60  ;;  %v533_v56 = vmul.f32 6.928203, %v532_v36  ;;  %vm541_vm5 = vmor %vm539_vm4, %vm540_vm2  ;;  %v546_v59 = vor.u32 1.1754944e-38, %v545_v27 }
  0xc8   : > { %v388_v25 = vsel %vm386_vm11, %v387_v58, %v385_v49  ;;  %v397_v24 = vsel %vm396_vm12, %v2069_v63, %v395_v33  ;;  %v542_v2 = vsel %vm541_vm5, %v2200_v54, %v538_v50  ;;  %vm544_vm6 = vcmp.eq.f32.partialorder %v543_v62, 8.507059e+37 }
  0xc9   : > { %v417_v52 = vsub.f32 1.5, %v416_v47  ;;  %v405_v3 = vsub.f32 1.5, %v404_v41  ;;  %v438_v5 = vmul.f32 %v2253_v46, %v2207_v48  ;;  %v547_v11 = vsel %vm544_vm6, %v546_v59, %v542_v2  ;;  %v2326_v47 = vpop.xlane.xlu0 %279 }
  0xca   : > { %1687 = vrcp.f32 %v2236_v31  ;;  %vm420_vm7 = vcmp.eq.f32.partialorder %v2130_v60, inf  ;;  %v548_v4 = vmul.f32 6.928203, %v547_v11  ;;  %v731_v42 = vmul.f32 %v533_v56, %v1930_v1 }
  0xcb   : > { %v550_v58 = vmul.f32 %v2217_v12, %v2157_v28  ;;  %v2274_v8 = vmax.f32 %v388_v25, 1e-12  ;;  %v400_v54 = vsel %vm398_vm13, %v399_v61, %v397_v24  ;;  %vm408_vm8 = vcmp.eq.f32.partialorder %v2143_v9, inf }
  0xcc   : > { %vm554_vm9 = vweird.f32 %v2157_v28  ;;  %v2282_v10 = vpop.eup %1685  ;;  %v732_v13 = vmul.f32 %v548_v4, %v1945_v7  ;;  %vm555_vm10 = vweird.f32 %v2217_v12  ;;  %v558_v1 = vand.u32 2147483647, %v2157_v28 }
  0xcd   : > { %v551_v15 = vsub.f32 1.0, %v550_v58  ;;  %v418_v16 = vmul.f32 %v2171_v37, %v417_v52  ;;  %v406_v21 = vmul.f32 %v2179_v43, %v405_v3  ;;  %v439_v63 = vmul.f32 %v2253_v46, %v438_v5  ;;  %vm2303_vm12 = vmor %vm554_vm9, %vm555_vm10 }
  0xce   : > { %v560_v61 = vand.u32 2147483648, %v2157_v28  ;;  %1689 = vrcp.f32 %v2258_v51  ;;  %v751_v22 = vmul.f32 %v2190_v53, %v731_v42  ;;  %v752_v23 = vmul.f32 %v2190_v53, %v732_v13 }
  0xcf   : > { %v552_v7 = vmul.f32 %v2217_v12, %v551_v15  ;;  %1691 = vrcp.f32 %v2274_v8  ;;  %v2296_v39 = vmax.f32 %v400_v54, 1e-12  ;;  %vm422_vm11 = vcmp.eq.f32.partialorder %v2130_v60, 0.0 }
  0xd0   : > { %v426_v37 = vmul.f32 %v2282_v10, %v2244_v34  ;;  %v561_v26 = vor.u32 1.1754944e-38, %v560_v61  ;;  %v2307_v17 = vpop.eup %1687  ;;  %vm410_vm13 = vcmp.eq.f32.partialorder %v2143_v9, 0.0  ;;  %v766_v45 = vpack.c.bf16 %v752_v23, %v751_v22 }
  0xd1   : > { %v553_v30 = vadd.f32 %v2217_v12, %v552_v7  ;;  %vm559_vm14 = vcmp.eq.f32.partialorder %v558_v1, 8.507059e+37  ;;  %v565_v49 = vmul.f32 %v2232_v40, %v2175_v14  ;;  %v419_v32 = vmul.f32 %v418_v16, %v2130_v60 }
  0xd2   : > { %v407_v28 = vmul.f32 %v406_v21, %v2143_v9  ;;  %v440_v33 = vmul.f32 0.5, %v439_v63  ;;  %vm569_vm15 = vweird.f32 %v2175_v14  ;;  %vm570_vm1 = vweird.f32 %v2232_v40 }
  0xd3   : > { %v557_v27 = vsel %vm2303_vm12, %v2217_v12, %v553_v30  ;;  %v566_v57 = vsub.f32 1.0, %v565_v49  ;;  %v573_v38 = vand.u32 2147483647, %v2175_v14  ;;  %v427_v62 = vmul.f32 %v2282_v10, %v426_v37  ;;  %vm2346_vm2 = vmor %vm569_vm15, %vm570_vm1 }
  0xd4   : > { %v562_v41 = vsel %vm559_vm14, %v561_v26, %v557_v27  ;;  %v575_v44 = vand.u32 2147483648, %v2175_v14  ;;  %v580_v36 = vmul.f32 %v2307_v17, %v2236_v31  ;;  %v2331_v50 = vpop.eup %1689  ;;  %1693 = vrcp.f32 %v2296_v39 }
  0xd5   : > { %v411_v12 = vand.u32 2147483648, %v2143_v9  ;;  %v563_v56 = vmul.f32 6.928203, %v562_v41  ;;  %v567_v59 = vmul.f32 %v2232_v40, %v566_v57  ;;  %v2336_v25 = vpop.eup %1691  ;;  %v421_v24 = vsel %vm420_vm7, %v2130_v60, %v419_v32 }
  0xd6   : > { %1695 = vrsqrt.f32 %v2318_v35  ;;  %v576_v52 = vor.u32 1.1754944e-38, %v575_v44  ;;  %v581_v3 = vsub.f32 1.0, %v580_v36  ;;  %v409_v5 = vsel %vm408_vm8, %v2143_v9, %v407_v28 }
  0xd7   : > { %1514 = vmatmul.msk.bf16.gmra.mxu0 %vm232_vm0, %v766_v45  ;;  %1522 = vmatmul.msk.bf16.gmra.mxu1 %vm232_vm0, %v766_v45  ;;  %1697 = vrsqrt.f32 %v2326_v47  ;;  %v568_v11 = vadd.f32 %v2232_v40, %v567_v59  ;;  %vm574_vm3 = vcmp.eq.f32.partialorder %v573_v38, 8.507059e+37  ;;  %v441_v4 = vsub.f32 1.5, %v440_v33 }
  0xd8   : > { %v428_v42 = vmul.f32 0.5, %v427_v62  ;;  %v733_v58 = vmul.f32 %v563_v56, %v1927_v0  ;;  %v582_v14 = vmul.f32 %v2307_v17, %v581_v3  ;;  %vm584_vm4 = vweird.f32 %v2236_v31 }
  0xd9   : > { %v572_v54 = vsel %vm2346_vm2, %v2232_v40, %v568_v11  ;;  %vm585_vm5 = vweird.f32 %v2307_v17  ;;  %v588_v13 = vand.u32 2147483647, %v2236_v31  ;;  %v590_v1 = vand.u32 2147483648, %v2236_v31 }
  0xda   : > { %v577_v15 = vsel %vm574_vm3, %v576_v52, %v572_v54  ;;  %v2364_v16 = vpop.eup %1693  ;;  %v424_v0 = vsel %vm422_vm11, %v423_v55, %v421_v24  ;;  %v583_v63 = vadd.f32 %v2307_v17, %v582_v14  ;;  %v595_v40 = vmul.f32 %v2331_v50, %v2258_v51  ;;  %vm2381_vm6 = vmor %vm584_vm4, %vm585_vm5 }
  0xdb   : > { %v578_v21 = vmul.f32 6.928203, %v577_v15  ;;  %v412_v22 = vsel %vm410_vm13, %v411_v12, %v409_v5  ;;  %v442_v23 = vmul.f32 %v2253_v46, %v441_v4  ;;  %v429_v7 = vsub.f32 1.5, %v428_v42 }
  0xdc   : > { %v2373_v61 = vpop.eup %1695  ;;  %v753_v37 = vmul.f32 %v2190_v53, %v733_v58  ;;  %vm2388_vm7 = vcmp.eq.f32.partialorder %v588_v13, 8.507059e+37  ;;  %v596_v9 = vsub.f32 1.0, %v595_v40  ;;  %vm599_vm8 = vweird.f32 %v2258_v51 }
  0xdd   : > { %v2385_v55 = vpop.eup %1697  ;;  %v734_v43 = vmul.f32 %v578_v21, %v1942_v6  ;;  %v591_v46 = vor.u32 1.1754944e-38, %v590_v1  ;;  %vm600_vm9 = vweird.f32 %v2331_v50  ;;  %v603_v31 = vand.u32 2147483647, %v2258_v51 }
  0xde   : > { %v605_v45 = vand.u32 2147483648, %v2258_v51  ;;  %v587_v6 = vsel %vm2381_vm6, %v2307_v17, %v583_v63  ;;  %v597_v49 = vmul.f32 %v2331_v50, %v596_v9  ;;  %v610_v32 = vmul.f32 %v2336_v25, %v2274_v8  ;;  %vm2408_vm11 = vmor %vm599_vm8, %vm600_vm9 }
  0xdf   : > { %v754_v30 = vmul.f32 %v2190_v53, %v734_v43  ;;  %vm444_vm10 = vcmp.eq.f32.partialorder %v2207_v48, inf  ;;  %v450_v28 = vmul.f32 %v2373_v61, %v2318_v35  ;;  %v462_v33 = vmul.f32 %v2385_v55, %v2326_v47 }
  0xe0   : > { %v606_v27 = vor.u32 1.1754944e-38, %v605_v45  ;;  %v2412_v57 = vmax.f32 %v412_v22, 1e-12  ;;  %v598_v38 = vadd.f32 %v2331_v50, %v597_v49  ;;  %vm604_vm12 = vcmp.eq.f32.partialorder %v603_v31, 8.507059e+37 }
  0xe1   : > { %v767_v17 = vpack.c.bf16 %v754_v30, %v753_v37  ;;  %v2415_v62 = vmax.f32 %v424_v0, 1e-12  ;;  %v430_v41 = vmul.f32 %v2282_v10, %v429_v7  ;;  %v592_v44 = vsel %vm2388_vm7, %v591_v46, %v587_v6 }
  0xe2   : > { %v625_v36 = vmul.f32 %v2364_v16, %v2296_v39  ;;  %v443_v12 = vmul.f32 %v442_v23, %v2207_v48  ;;  %vm446_vm13 = vcmp.eq.f32.partialorder %v2207_v48, 0.0  ;;  %v602_v56 = vsel %vm2408_vm11, %v2331_v50, %v598_v38 }
  0xe3   : > { %v611_v59 = vsub.f32 1.0, %v610_v32  ;;  %v451_v10 = vmul.f32 %v2373_v61, %v450_v28  ;;  %v463_v24 = vmul.f32 %v2385_v55, %v462_v33  ;;  %v607_v2 = vsel %vm604_vm12, %v606_v27, %v602_v56 }
  0xe4   : > { %v626_v52 = vsub.f32 1.0, %v625_v36  ;;  %1699 = vrcp.f32 %v2412_v57  ;;  %v447_v3 = vand.u32 2147483648, %v2207_v48  ;;  %v593_v5 = vmul.f32 6.928203, %v592_v44 }
  0xe5   : > { %v608_v11 = vmul.f32 6.928203, %v607_v2  ;;  %1701 = vrcp.f32 %v2415_v62  ;;  %v431_v4 = vmul.f32 %v430_v41, %v2244_v34  ;;  %vm432_vm14 = vcmp.eq.f32.partialorder %v2244_v34, inf }
  0xe6   : > { %vm434_vm15 = vcmp.eq.f32.partialorder %v2244_v34, 0.0  ;;  %v445_v50 = vsel %vm444_vm10, %v2207_v48, %v443_v12  ;;  %v435_v42 = vand.u32 2147483648, %v2244_v34  ;;  %v612_v58 = vmul.f32 %v2336_v25, %v611_v59 }
  0xe7   : > { %1515 = vmatmul.msk.bf16.gmra.mxu0 %vm232_vm0, %v767_v17  ;;  %1523 = vmatmul.msk.bf16.gmra.mxu1 %vm232_vm0, %v767_v17  ;;  %v627_v14 = vmul.f32 %v2364_v16, %v626_v52  ;;  %v452_v54 = vmul.f32 0.5, %v451_v10  ;;  %v464_v13 = vmul.f32 0.5, %v463_v24  ;;  %vm614_vm1 = vweird.f32 %v2274_v8 }
  0xe8   : > { %vm615_vm2 = vweird.f32 %v2336_v25  ;;  %v735_v15 = vmul.f32 %v593_v5, %v1969_v20  ;;  %v736_v1 = vmul.f32 %v608_v11, %v1963_v18  ;;  %vm629_vm3 = vweird.f32 %v2296_v39 }
  0xe9   : > { %vm630_vm4 = vweird.f32 %v2364_v16  ;;  %v433_v0 = vsel %vm432_vm14, %v2244_v34, %v431_v4  ;;  %v618_v21 = vand.u32 2147483647, %v2274_v8  ;;  %v620_v63 = vand.u32 2147483648, %v2274_v8  ;;  %vm2456_vm5 = vmor %vm614_vm1, %vm615_vm2  ;;  %v1775_v8 = vld [vmem:[%s1924_s5 + $0x50] sm:$0xff] }
  0xea   : > { %v635_v40 = vand.u32 2147483648, %v2296_v39  ;;  %v2453_v22 = vpop.eup %1699  ;;  %v613_v23 = vadd.f32 %v2336_v25, %v612_v58  ;;  %v628_v18 = vadd.f32 %v2364_v16, %v627_v14  ;;  %v633_v7 = vand.u32 2147483647, %v2296_v39  ;;  %vm2464_vm6 = vmor %vm629_vm3, %vm630_vm4 }
  0xeb   : > { %v2462_v37 = vpop.eup %1701  ;;  %v453_v60 = vsub.f32 1.5, %v452_v54  ;;  %v465_v43 = vsub.f32 1.5, %v464_v13  ;;  %v448_v26 = vsel %vm446_vm13, %v447_v3, %v445_v50  ;;  %v436_v9 = vsel %vm434_vm15, %v435_v42, %v433_v0 }
  0xec   : > { %v755_v46 = vmul.f32 %v2190_v53, %v735_v15  ;;  %v756_v31 = vmul.f32 %v2190_v53, %v736_v1  ;;  %vm619_vm7 = vcmp.eq.f32.partialorder %v618_v21, 8.507059e+37  ;;  %v621_v39 = vor.u32 1.1754944e-38, %v620_v63 }
  0xed   : > { %v636_v45 = vor.u32 1.1754944e-38, %v635_v40  ;;  %v640_v30 = vmul.f32 %v2453_v22, %v2412_v57  ;;  %v617_v6 = vsel %vm2456_vm5, %v2336_v25, %v613_v23  ;;  %v632_v48 = vsel %vm2464_vm6, %v2364_v16, %v628_v18 }
  0xee   : > { %vm634_vm8 = vcmp.eq.f32.partialorder %v633_v7, 8.507059e+37  ;;  %v655_v34 = vmul.f32 %v2462_v37, %v2415_v62  ;;  %v454_v49 = vmul.f32 %v2373_v61, %v453_v60  ;;  %v466_v32 = vmul.f32 %v2385_v55, %v465_v43 }
  0xef   : > { %v2486_v28 = vmax.f32 %v448_v26, 1e-12  ;;  %v768_v33 = vpack.c.bf16 %v756_v31, %v755_v46  ;;  %v2488_v51 = vmax.f32 %v436_v9, 1e-12  ;;  %v622_v27 = vsel %vm619_vm7, %v621_v39, %v617_v6  ;;  %v1776_v9 = vld [vmem:[%s1924_s5 + $0x58] sm:$0xff] }
  0xf0   : > { %v637_v17 = vsel %vm634_vm8, %v636_v45, %v632_v48  ;;  %v641_v25 = vsub.f32 1.0, %v640_v30  ;;  %v656_v16 = vsub.f32 1.0, %v655_v34  ;;  %v455_v38 = vmul.f32 %v454_v49, %v2318_v35 }
  0xf1   : > { %vm456_vm9 = vcmp.eq.f32.partialorder %v2318_v35, inf  ;;  %v467_v61 = vmul.f32 %v466_v32, %v2326_v47  ;;  %1703 = vrcp.f32 %v2486_v28  ;;  %vm468_vm10 = vcmp.eq.f32.partialorder %v2326_v47, inf }
  0xf2   : > { %v623_v55 = vmul.f32 6.928203, %v622_v27  ;;  %v638_v41 = vmul.f32 6.928203, %v637_v17  ;;  %1705 = vrcp.f32 %v2488_v51  ;;  %vm458_vm11 = vcmp.eq.f32.partialorder %v2318_v35, 0.0 }
  0xf3   : > { %v642_v44 = vmul.f32 %v2453_v22, %v641_v25  ;;  %v459_v36 = vand.u32 2147483648, %v2318_v35  ;;  %vm470_vm12 = vcmp.eq.f32.partialorder %v2326_v47, 0.0  ;;  %v471_v12 = vand.u32 2147483648, %v2326_v47 }
  0xf4   : > { %v657_v56 = vmul.f32 %v2462_v37, %v656_v16  ;;  %v457_v59 = vsel %vm456_vm9, %v2318_v35, %v455_v38  ;;  %v469_v10 = vsel %vm468_vm10, %v2326_v47, %v467_v61  ;;  %vm644_vm13 = vweird.f32 %v2412_v57 }
  0xf5   : > { %vm645_vm14 = vweird.f32 %v2453_v22  ;;  %v737_v24 = vmul.f32 %v623_v55, %v1966_v19  ;;  %v738_v2 = vmul.f32 %v638_v41, %v1983_v29  ;;  %vm659_vm15 = vweird.f32 %v2415_v62 }
  0xf6   : > { %vm660_vm1 = vweird.f32 %v2462_v37  ;;  %v643_v52 = vadd.f32 %v2453_v22, %v642_v44  ;;  %v648_v3 = vand.u32 2147483647, %v2412_v57  ;;  %v650_v5 = vand.u32 2147483648, %v2412_v57  ;;  %vm2518_vm2 = vmor %vm644_vm13, %vm645_vm14 }
  0xf7   : > { %1516 = vmatmul.msk.bf16.gmra.mxu0 %vm232_vm0, %v768_v33  ;;  %1524 = vmatmul.msk.bf16.gmra.mxu1 %vm232_vm0, %v768_v33  ;;  %v665_v11 = vand.u32 2147483648, %v2415_v62  ;;  %v2516_v4 = vpop.eup %1703  ;;  %v658_v19 = vadd.f32 %v2462_v37, %v657_v56  ;;  %v663_v29 = vand.u32 2147483647, %v2415_v62  ;;  %vm2524_vm3 = vmor %vm659_vm15, %vm660_vm1  ;;  %v460_v57 = vsel %vm458_vm11, %v459_v36, %v457_v59 }
  0xf8   : > { %v1706_v42 = vpop.eup %1705  ;;  %v472_v14 = vsel %vm470_vm12, %v471_v12, %v469_v10  ;;  %v757_v54 = vmul.f32 %v2190_v53, %v737_v24  ;;  %v758_v13 = vmul.f32 %v2190_v53, %v738_v2  ;;  %v647_v15 = vsel %vm2518_vm2, %v2453_v22, %v643_v52  ;;  %v1777_v24 = vld [vmem:[%s1924_s5 + $0x60] sm:$0xff]  ;;  %v1778_v52 = vld [vmem:[%s1924_s5 + $0x68] sm:$0xff] }
  0xf9   : > { %vm649_vm4 = vcmp.eq.f32.partialorder %v648_v3, 8.507059e+37  ;;  %v651_v62 = vor.u32 1.1754944e-38, %v650_v5  ;;  %v666_v1 = vor.u32 1.1754944e-38, %v665_v11  ;;  %v662_v0 = vsel %vm2524_vm3, %v2462_v37, %v658_v19 }
  0xfa   : > { %vm664_vm5 = vcmp.eq.f32.partialorder %v663_v29, 8.507059e+37  ;;  %v670_v35 = vmul.f32 %v1706_v42, %v2488_v51  ;;  %v685_v47 = vmul.f32 %v2516_v4, %v2486_v28  ;;  %v2543_v21 = vmax.f32 %v460_v57, 1e-12 }
  0xfb   : > { %v769_v63 = vpack.c.bf16 %v758_v13, %v757_v54  ;;  %v2545_v40 = vmax.f32 %v472_v14, 1e-12  ;;  %v652_v22 = vsel %vm649_vm4, %v651_v62, %v647_v15  ;;  %v667_v23 = vsel %vm664_vm5, %v666_v1, %v662_v0 }
  0xfc   : > { %v671_v20 = vsub.f32 1.0, %v670_v35  ;;  %v686_v18 = vsub.f32 1.0, %v685_v47  ;;  %1707 = vrcp.f32 %v2543_v21  ;;  %v653_v7 = vmul.f32 6.928203, %v652_v22  ;;  %v1779_v47 = vld [vmem:[%s1924_s5 + $0x70] sm:$0xff] }
  0xfd   : > { %v668_v37 = vmul.f32 6.928203, %v667_v23  ;;  %1709 = vrcp.f32 %v2545_v40  ;;  %vm674_vm6 = vweird.f32 %v2488_v51  ;;  %vm675_vm7 = vweird.f32 %v1706_v42 }
  0xfe   : > { %v672_v60 = vmul.f32 %v1706_v42, %v671_v20  ;;  %v687_v43 = vmul.f32 %v2516_v4, %v686_v18  ;;  %v739_v26 = vmul.f32 %v1775_v8, %v653_v7  ;;  %vm689_vm8 = vweird.f32 %v2486_v28  ;;  %vm2561_vm10 = vmor %vm674_vm6, %vm675_vm7 }
  0xff   : > { %v740_v46 = vmul.f32 %v1776_v9, %v668_v37  ;;  %vm690_vm9 = vweird.f32 %v2516_v4  ;;  %v678_v31 = vand.u32 2147483647, %v2488_v51  ;;  %v680_v39 = vand.u32 2147483648, %v2488_v51 }
 0x100   : > { %v693_v45 = vand.u32 2147483647, %v2486_v28  ;;  %v695_v30 = vand.u32 2147483648, %v2486_v28  ;;  %v673_v48 = vadd.f32 %v1706_v42, %v672_v60  ;;  %v688_v49 = vadd.f32 %v2516_v4, %v687_v43  ;;  %vm691_vm11 = vmor %vm689_vm8, %vm690_vm9  ;;  %v1595_v60 = vld [vmem:[%s2773_s3 + $0x38] sm:$0xff] }
 0x101   : > { %v759_v33 = vmul.f32 %v2190_v53, %v739_v26  ;;  %v760_v27 = vmul.f32 %v2190_v53, %v740_v46  ;;  %vm679_vm12 = vcmp.eq.f32.partialorder %v678_v31, 8.507059e+37  ;;  %v681_v51 = vor.u32 1.1754944e-38, %v680_v39  ;;  %1339 = vmatpush.bf16.msra.mxu2 %v1595_v60  ;;  %1597 = vmatpush.bf16.msra.mxu3 %v1595_v60  ;;  %v1594_v46 = vld [vmem:[%s2773_s3 + $0x30] sm:$0xff]  ;;  %v1593_v31 = vld [vmem:[%s2773_s3 + $0x28] sm:$0xff] }
 0x102   : > { %v1708_v6 = vpop.eup %1707  ;;  %vm694_vm13 = vcmp.eq.f32.partialorder %v693_v45, 8.507059e+37  ;;  %v696_v17 = vor.u32 1.1754944e-38, %v695_v30  ;;  %v677_v28 = vsel %vm2561_vm10, %v1706_v42, %v673_v48  ;;  %v692_v25 = vsel %vm691_vm11, %v2516_v4, %v688_v49 }
 0x103   : > { %v1710_v32 = vpop.eup %1709  ;;  %v700_v16 = vmul.f32 %v1708_v6, %v2543_v21  ;;  %v770_v61 = vpack.c.bf16 %v760_v27, %v759_v33  ;;  %v682_v55 = vsel %vm679_vm12, %v681_v51, %v677_v28  ;;  %vm704_vm14 = vweird.f32 %v2543_v21  ;;  %v1592_v33 = vld [vmem:[%s2773_s3 + $0x20] sm:$0xff]  ;;  %v1591_v51 = vld [vmem:[%s2773_s3 + $0x18] sm:$0xff] }
 0x104   : > { %v715_v38 = vmul.f32 %v1710_v32, %v2545_v40  ;;  %v697_v41 = vsel %vm694_vm13, %v696_v17, %v692_v25  ;;  %v683_v12 = vmul.f32 6.928203, %v682_v55  ;;  %vm705_vm15 = vweird.f32 %v1708_v6 }
 0x105   : > { %v701_v44 = vsub.f32 1.0, %v700_v16  ;;  %v698_v56 = vmul.f32 6.928203, %v697_v41  ;;  %vm719_vm1 = vweird.f32 %v2545_v40  ;;  %vm720_vm2 = vweird.f32 %v1710_v32  ;;  %vm706_vm3 = vmor %vm704_vm14, %vm705_vm15  ;;  %1340 = vmatpush.bf16.msra.mxu2 %v1594_v46  ;;  %1598 = vmatpush.bf16.msra.mxu3 %v1594_v46 }
 0x106   : > { %v716_v36 = vsub.f32 1.0, %v715_v38  ;;  %v741_v2 = vmul.f32 %v1777_v24, %v683_v12  ;;  %v710_v5 = vand.u32 2147483648, %v2543_v21  ;;  %v725_v11 = vand.u32 2147483648, %v2545_v40  ;;  %vm721_vm4 = vmor %vm719_vm1, %vm720_vm2 }
 0x107   : > { %1517 = vmatmul.msk.bf16.gmra.mxu0 %vm232_vm0, %v769_v63  ;;  %1525 = vmatmul.msk.bf16.gmra.mxu1 %vm232_vm0, %v769_v63  ;;  %v702_v59 = vmul.f32 %v1708_v6, %v701_v44  ;;  %v742_v3 = vmul.f32 %v1778_v52, %v698_v56  ;;  %v708_v50 = vand.u32 2147483647, %v2543_v21  ;;  %v723_v29 = vand.u32 2147483647, %v2545_v40  ;;  %v1780_v63 = vld [vmem:[%s1924_s5 + $0x78] sm:$0xff]  ;;  %s1596_s5 = sshll.u32 %s1893_s19, 7 }
 0x108   : > { %v717_v10 = vmul.f32 %v1710_v32, %v716_v36  ;;  %v761_v42 = vmul.f32 %v2190_v53, %v741_v2  ;;  %v711_v57 = vor.u32 1.1754944e-38, %v710_v5  ;;  %v726_v14 = vor.u32 1.1754944e-38, %v725_v11  ;;  %v1589_v5 = vld [vmem:[%s2773_s3 + $0x8] sm:$0xff]  ;;  %s1416_s29 = scalar_lea.hbm %s2774_s4, %s1596_s5 }
 0x109   : > { %v703_v4 = vadd.f32 %v1708_v6, %v702_v59  ;;  %v762_v58 = vmul.f32 %v2190_v53, %v742_v3  ;;  %vm709_vm5 = vcmp.eq.f32.partialorder %v708_v50, 8.507059e+37  ;;  %vm724_vm6 = vcmp.eq.f32.partialorder %v723_v29, 8.507059e+37  ;;  %1341 = vmatpush.bf16.msra.mxu2 %v1593_v31  ;;  %1599 = vmatpush.bf16.msra.mxu3 %v1593_v31  ;;  %v1590_v59 = vld [vmem:[%s2773_s3 + $0x10] sm:$0xff]  ;;  %s1419_s6 = sshll.u32 %s1416_s29, 4  ;;  %s1420_s6 = int_to_ptr.hbm [resolvable:$true] %s1419_s6 }
 0x10a   : > { %v718_v19 = vadd.f32 %v1710_v32, %v717_v10  ;;  %s1795_s8 = sshra.s32 %s1420_s6, 4  ;;  %s1796_s8 = int_to_ptr.hbm [resolvable:$true] %s1795_s8 }
 0x10b   : > { %v707_v54 = vsel %vm706_vm3, %v1708_v6, %v703_v4  ;;  %v771_v15 = vpack.c.bf16 %v762_v58, %v761_v42  ;;  %s1797_s9 = scalar_lea.hbm %s1796_s8, 128  ;;  %p1802_p0 = scmp.lt.s32.totalorder %s1796_s8, %s2774_s4 }
 0x10c   : > { %v722_v13 = vsel %vm721_vm4, %v1710_v32, %v718_v19  ;;  %v712_v62 = vsel %vm709_vm5, %v711_v57, %v707_v54  ;;  %p1798_p11 = scmp.ne.s32.totalorder %s1796_s8, %s1797_s9  ;;  %p1803_p1 = scmp.lt.s32.totalorder %s1801_s11, %s1797_s9 }
 0x10d   : > { %v727_v1 = vsel %vm724_vm6, %v726_v14, %v722_v13  ;;  %v713_v0 = vmul.f32 6.928203, %v712_v62  ;;  %1342 = vmatpush.bf16.msra.mxu2 %v1592_v33  ;;  %1600 = vmatpush.bf16.msra.mxu3 %v1592_v33 }
 0x10e   : > { %v728_v35 = vmul.f32 6.928203, %v727_v1  ;;  %p1799_p12 = pnand %p1798_p11, %p1910_p5  ;;  %p1804_p2 = por %p1803_p1, %p1802_p0 }
 0x10f   : > { %v743_v21 = vmul.f32 %v1779_v47, %v713_v0  ;;  %v1588_v0 = vld [vmem:[%s2773_s3] sm:$0xff] }
 0x110   : > { %v744_v40 = vmul.f32 %v1780_v63, %v728_v35  ;;  %p1800_p13 = pneg %p1799_p12 }
 0x111   : > { %v763_v22 = vmul.f32 %v2190_v53, %v743_v21  ;;  %1343 = vmatpush.bf16.msra.mxu2 %v1591_v51  ;;  %1601 = vmatpush.bf16.msra.mxu3 %v1591_v51 }
 0x112   : > { %v764_v23 = vmul.f32 %v2190_v53, %v744_v40  ;;  %p1805_p3 = pnand %p1804_p2, %p1800_p13 }
 0x114   : > { %v772_v20 = vpack.c.bf16 %v764_v23, %v763_v22 }
 0x115   : > { %1344 = vmatpush.bf16.msra.mxu2 %v1590_v59  ;;  %1602 = vmatpush.bf16.msra.mxu3 %v1590_v59 }
 0x117   : > { %1518 = vmatmul.msk.bf16.gmra.mxu0 %vm232_vm0, %v770_v61  ;;  %1526 = vmatmul.msk.bf16.gmra.mxu1 %vm232_vm0, %v770_v61 }
 0x119   : > { %1345 = vmatpush.bf16.msra.mxu2 %v1589_v5  ;;  %1603 = vmatpush.bf16.msra.mxu3 %v1589_v5 }
 0x11d   : > { %1346 = vmatpush.bf16.msra.mxu2 %v1588_v0  ;;  %1604 = vmatpush.bf16.msra.mxu3 %v1588_v0 }
 0x127   : > { %1519 = vmatmul.msk.bf16.gmra.mxu0 %vm232_vm0, %v771_v15  ;;  %1527 = vmatmul.msk.bf16.gmra.mxu1 %vm232_vm0, %v771_v15 }
 0x137   : > { %1520 = vmatmul.msk.bf16.gmra.mxu0 %vm232_vm0, %v772_v20  ;;  %1528 = vmatmul.msk.bf16.gmra.mxu1 %vm232_vm0, %v772_v20 }
 0x144   : > { %v2593_v18 = vpop.f32.mrf.mxu0  ;;  %v2595_v7 = vpop.f32.mrf.mxu1 }
 0x145   : > { %v1529_v37 = vmul.f32 -1.442695, %v2595_v7 }
 0x147   : > { %1711 = vpow2.f32 %v1529_v37 }
 0x14c   : > { %v2601_v43 = vpop.f32.mrf.mxu1  ;;  %v2604_v9 = vpop.f32.mrf.mxu0 }
 0x14d   : > { %v1712_v53 = vpop.eup %1711  ;;  %v1530_v8 = vmul.f32 -1.442695, %v2601_v43 }
 0x14e   : > { %v979_v26 = vadd.f32 1.0, %v1712_v53 }
 0x14f   : > { %1713 = vpow2.f32 %v1530_v8 }
 0x150   : > { %1715 = vrcp.f32 %v979_v26  ;;  %v1006_v61 = vand.u32 2147483648, %v979_v26  ;;  %vm1000_vm7 = vweird.f32 %v979_v26  ;;  %v1004_v41 = vand.u32 2147483647, %v979_v26 }
 0x152   : > { %v1007_v10 = vor.u32 1.1754944e-38, %v1006_v61  ;;  %vm1005_vm9 = vcmp.eq.f32.partialorder %v1004_v41, 8.507059e+37 }
 0x154   : > { %v2612_v39 = vpop.f32.mrf.mxu1  ;;  %v2615_v49 = vpop.f32.mrf.mxu0 }
 0x155   : > { %v1714_v45 = vpop.eup %1713  ;;  %v1531_v30 = vmul.f32 -1.442695, %v2612_v39 }
 0x156   : > { %v1716_v6 = vpop.eup %1715  ;;  %v980_v48 = vadd.f32 1.0, %v1714_v45 }
 0x157   : > { %v996_v34 = vmul.f32 %v1716_v6, %v979_v26  ;;  %1717 = vpow2.f32 %v1531_v30  ;;  %vm1001_vm0 = vweird.f32 %v1716_v6 }
 0x158   : > { %1719 = vrcp.f32 %v980_v48  ;;  %vm2628_vm8 = vmor %vm1000_vm7, %vm1001_vm0  ;;  %v1019_v24 = vand.u32 2147483647, %v980_v48  ;;  %v1021_v2 = vand.u32 2147483648, %v980_v48  ;;  %vm1015_vm11 = vweird.f32 %v980_v48 }
 0x159   : > { %v997_v32 = vsub.f32 1.0, %v996_v34 }
 0x15a   : > { %vm1020_vm13 = vcmp.eq.f32.partialorder %v1019_v24, 8.507059e+37  ;;  %v1022_v58 = vor.u32 1.1754944e-38, %v1021_v2 }
 0x15b   : > { %v998_v27 = vmul.f32 %v1716_v6, %v997_v32 }
 0x15c   : > { %v2623_v17 = vpop.f32.mrf.mxu1  ;;  %v2638_v52 = vpop.f32.mrf.mxu0 }
 0x15d   : > { %v1718_v28 = vpop.eup %1717  ;;  %v999_v25 = vadd.f32 %v1716_v6, %v998_v27  ;;  %v1532_v16 = vmul.f32 -1.442695, %v2623_v17 }
 0x15e   : > { %v1720_v38 = vpop.eup %1719  ;;  %v2626_v55 = vadd.f32 1.0, %v1718_v28 }
 0x15f   : > { %v1011_v44 = vmul.f32 %v1720_v38, %v980_v48  ;;  %1721 = vpow2.f32 %v1532_v16  ;;  %v1003_v12 = vsel %vm2628_vm8, %v1716_v6, %v999_v25  ;;  %vm1016_vm10 = vweird.f32 %v1720_v38 }
 0x160   : > { %1723 = vrcp.f32 %v2626_v55  ;;  %v1008_v11 = vsel %vm1005_vm9, %v1007_v10, %v1003_v12  ;;  %vm1017_vm12 = vmor %vm1015_vm11, %vm1016_vm10  ;;  %v1036_v60 = vand.u32 2147483648, %v2626_v55  ;;  %vm1030_vm15 = vweird.f32 %v2626_v55 }
 0x161   : > { %v1012_v56 = vsub.f32 1.0, %v1011_v44  ;;  %v1235_v14 = vmul.f32 %v1008_v11, %v2595_v7 }
 0x163   : > { %v1013_v3 = vmul.f32 %v1720_v38, %v1012_v56  ;;  %v1251_v47 = vmul.f32 %v1235_v14, %v2593_v18  ;;  %v1034_v18 = vand.u32 2147483647, %v2626_v55 }
 0x164   : > { %v2643_v4 = vpop.f32.mrf.mxu1  ;;  %v2654_v63 = vpop.f32.mrf.mxu0 }
 0x165   : > { %v1722_v50 = vpop.eup %1721  ;;  %v1014_v19 = vadd.f32 %v1720_v38, %v1013_v3  ;;  %v1533_v29 = vmul.f32 -1.442695, %v2643_v4  ;;  %vm1035_vm2 = vcmp.eq.f32.partialorder %v1034_v18, 8.507059e+37 }
 0x166   : > { %v1724_v42 = vpop.eup %1723  ;;  %v982_v57 = vadd.f32 1.0, %v1722_v50 }
 0x167   : > { %v1018_v54 = vsel %vm1017_vm12, %v1720_v38, %v1014_v19  ;;  %v1026_v13 = vmul.f32 %v1724_v42, %v2626_v55  ;;  %1725 = vpow2.f32 %v1533_v29  ;;  %vm1031_vm14 = vweird.f32 %v1724_v42 }
 0x168   : > { %v1023_v15 = vsel %vm1020_vm13, %v1022_v58, %v1018_v54  ;;  %1727 = vrcp.f32 %v982_v57  ;;  %vm1032_vm1 = vmor %vm1030_vm15, %vm1031_vm14  ;;  %v1049_v46 = vand.u32 2147483647, %v982_v57  ;;  %v1051_v31 = vand.u32 2147483648, %v982_v57 }
 0x169   : > { %v1236_v62 = vmul.f32 %v1023_v15, %v2601_v43  ;;  %v1027_v1 = vsub.f32 1.0, %v1026_v13  ;;  %vm1045_vm4 = vweird.f32 %v982_v57 }
 0x16a   : > { %vm1050_vm6 = vcmp.eq.f32.partialorder %v1049_v46, 8.507059e+37  ;;  %v1052_v27 = vor.u32 1.1754944e-38, %v1051_v31 }
 0x16b   : > { %v1028_v35 = vmul.f32 %v1724_v42, %v1027_v1  ;;  %v1252_v21 = vmul.f32 %v1236_v62, %v2604_v9  ;;  %v1037_v9 = vor.u32 1.1754944e-38, %v1036_v60 }
 0x16c   : > { %v2656_v40 = vpop.f32.mrf.mxu1  ;;  %v854_v51 = vpop.f32.mrf.mxu0 }
 0x16d   : > { %v1726_v22 = vpop.eup %1725  ;;  %v1029_v23 = vadd.f32 %v1724_v42, %v1028_v35  ;;  %v1534_v20 = vmul.f32 -1.442695, %v2656_v40  ;;  %v1267_v7 = vpack.c.bf16 %v1252_v21, %v1251_v47 }
 0x16e   : > { %v1728_v37 = vpop.eup %1727  ;;  %v983_v43 = vadd.f32 1.0, %v1726_v22 }
 0x16f   : > { %v1041_v53 = vmul.f32 %v1728_v37, %v982_v57  ;;  %1729 = vpow2.f32 %v1534_v20  ;;  %1347 = vmatmul.bf16.vlgmr.msra.gmra.mxu2 %v1267_v7  ;;  %v1033_v8 = vsel %vm1032_vm1, %v1724_v42, %v1029_v23  ;;  %vm1046_vm3 = vweird.f32 %v1728_v37 }
 0x170   : > { %1731 = vrcp.f32 %v983_v43  ;;  %v1038_v30 = vsel %vm1035_vm2, %v1037_v9, %v1033_v8  ;;  %vm1047_vm5 = vmor %vm1045_vm4, %vm1046_vm3  ;;  %v1066_v3 = vand.u32 2147483648, %v983_v43  ;;  %vm1060_vm7 = vweird.f32 %v983_v43 }
 0x171   : > { %v1042_v26 = vsub.f32 1.0, %v1041_v53  ;;  %v1237_v25 = vmul.f32 %v1038_v30, %v2612_v39  ;;  %v1064_v11 = vand.u32 2147483647, %v983_v43 }
 0x172   : > { %v1067_v19 = vor.u32 1.1754944e-38, %v1066_v3 }
 0x173   : > { %v1043_v45 = vmul.f32 %v1728_v37, %v1042_v26  ;;  %v1253_v36 = vmul.f32 %v1237_v25, %v2615_v49  ;;  %vm1065_vm9 = vcmp.eq.f32.partialorder %v1064_v11, 8.507059e+37 }
 0x174   : > { %v2662_v6 = vpop.f32.mrf.mxu1  ;;  %v2672_v49 = vpop.f32.mrf.mxu0 }
 0x175   : > { %v1730_v48 = vpop.eup %1729  ;;  %v1044_v34 = vadd.f32 %v1728_v37, %v1043_v45  ;;  %v1535_v32 = vmul.f32 -1.442695, %v2662_v6 }
 0x176   : > { %v1732_v33 = vpop.eup %1731  ;;  %v984_v28 = vadd.f32 1.0, %v1730_v48 }
 0x177   : > { %v1048_v16 = vsel %vm1047_vm5, %v1728_v37, %v1044_v34  ;;  %v1056_v38 = vmul.f32 %v1732_v33, %v983_v43  ;;  %1733 = vpow2.f32 %v1535_v32  ;;  %vm1061_vm0 = vweird.f32 %v1732_v33 }
 0x178   : > { %v1053_v61 = vsel %vm1050_vm6, %v1052_v27, %v1048_v16  ;;  %1735 = vrcp.f32 %v984_v28  ;;  %vm1062_vm8 = vmor %vm1060_vm7, %vm1061_vm0  ;;  %v1079_v29 = vand.u32 2147483647, %v984_v28  ;;  %v1081_v42 = vand.u32 2147483648, %v984_v28 }
 0x179   : > { %v1238_v55 = vmul.f32 %v1053_v61, %v2623_v17  ;;  %v1057_v41 = vsub.f32 1.0, %v1056_v38  ;;  %vm1075_vm11 = vweird.f32 %v984_v28 }
 0x17a   : > { %vm1080_vm13 = vcmp.eq.f32.partialorder %v1079_v29, 8.507059e+37  ;;  %v1082_v1 = vor.u32 1.1754944e-38, %v1081_v42 }
 0x17b   : > { %v1058_v44 = vmul.f32 %v1732_v33, %v1057_v41  ;;  %v1254_v12 = vmul.f32 %v1238_v55, %v2638_v52 }
 0x17c   : > { %v2669_v56 = vpop.f32.mrf.mxu1  ;;  %v859_v7 = vpop.f32.mrf.mxu0 }
 0x17d   : > { %v1734_v59 = vpop.eup %1733  ;;  %v1059_v10 = vadd.f32 %v1732_v33, %v1058_v44  ;;  %v1536_v39 = vmul.f32 -1.442695, %v2669_v56  ;;  %v1268_v24 = vpack.c.bf16 %v1254_v12, %v1253_v36 }
 0x17e   : > { %v1736_v2 = vpop.eup %1735  ;;  %v985_v5 = vadd.f32 1.0, %v1734_v59 }
 0x17f   : > { %v1071_v17 = vmul.f32 %v1736_v2, %v984_v28  ;;  %1737 = vpow2.f32 %v1536_v39  ;;  %1352 = vmatmul.bf16.gmra.mxu2 %v1268_v24  ;;  %v1063_v52 = vsel %vm1062_vm8, %v1732_v33, %v1059_v10  ;;  %vm1076_vm10 = vweird.f32 %v1736_v2 }
 0x180   : > { %1739 = vrcp.f32 %v985_v5  ;;  %v1068_v57 = vsel %vm1065_vm9, %v1067_v19, %v1063_v52  ;;  %vm1077_vm12 = vmor %vm1075_vm11, %vm1076_vm10  ;;  %v1096_v46 = vand.u32 2147483648, %v985_v5  ;;  %vm1090_vm15 = vweird.f32 %v985_v5 }
 0x181   : > { %v1072_v50 = vsub.f32 1.0, %v1071_v17  ;;  %v1239_v35 = vmul.f32 %v1068_v57, %v2643_v4  ;;  %v1094_v45 = vand.u32 2147483647, %v985_v5 }
 0x182   : > { %v1097_v48 = vor.u32 1.1754944e-38, %v1096_v46 }
 0x183   : > { %v1073_v58 = vmul.f32 %v1736_v2, %v1072_v50  ;;  %v1255_v60 = vmul.f32 %v1239_v35, %v2654_v63  ;;  %vm1095_vm2 = vcmp.eq.f32.partialorder %v1094_v45, 8.507059e+37 }
 0x184   : > { %v2674_v14 = vpop.f32.mrf.mxu1 }
 0x185   : > { %v1738_v54 = vpop.eup %1737  ;;  %v1074_v13 = vadd.f32 %v1736_v2, %v1073_v58  ;;  %v1537_v15 = vmul.f32 -1.442695, %v2674_v14 }
 0x186   : > { %v1740_v62 = vpop.eup %1739  ;;  %v986_v0 = vadd.f32 1.0, %v1738_v54 }
 0x187   : > { %v1078_v47 = vsel %vm1077_vm12, %v1736_v2, %v1074_v13  ;;  %v1086_v21 = vmul.f32 %v1740_v62, %v985_v5  ;;  %1741 = vpow2.f32 %v1537_v15  ;;  %vm1091_vm14 = vweird.f32 %v1740_v62 }
 0x188   : > { %v1083_v22 = vsel %vm1080_vm13, %v1082_v1, %v1078_v47  ;;  %1743 = vrcp.f32 %v986_v0  ;;  %vm1092_vm1 = vmor %vm1090_vm15, %vm1091_vm14  ;;  %v1109_v34 = vand.u32 2147483647, %v986_v0  ;;  %v1111_v32 = vand.u32 2147483648, %v986_v0 }
 0x189   : > { %v1240_v23 = vmul.f32 %v1083_v22, %v2656_v40  ;;  %v1087_v20 = vsub.f32 1.0, %v1086_v21  ;;  %vm1105_vm4 = vweird.f32 %v986_v0 }
 0x18a   : > { %vm1110_vm6 = vcmp.eq.f32.partialorder %v1109_v34, 8.507059e+37  ;;  %v1112_v55 = vor.u32 1.1754944e-38, %v1111_v32 }
 0x18b   : > { %v1088_v37 = vmul.f32 %v1740_v62, %v1087_v20  ;;  %v1256_v43 = vmul.f32 %v1240_v23, %v854_v51  ;;  %v2683_v51 = vpop.f32.mrf.mxu0 }
 0x18c   : > { %v2680_v18 = vpop.f32.mrf.mxu1 }
 0x18d   : > { %v1742_v53 = vpop.eup %1741  ;;  %v1089_v8 = vadd.f32 %v1740_v62, %v1088_v37  ;;  %v1538_v4 = vmul.f32 -1.442695, %v2680_v18  ;;  %v1269_v26 = vpack.c.bf16 %v1256_v43, %v1255_v60 }
 0x18e   : > { %v1744_v9 = vpop.eup %1743  ;;  %v987_v31 = vadd.f32 1.0, %v1742_v53 }
 0x18f   : > { %v1101_v40 = vmul.f32 %v1744_v9, %v986_v0  ;;  %1745 = vpow2.f32 %v1538_v4  ;;  %1357 = vmatmul.bf16.gmra.mxu2 %v1269_v26  ;;  %v1093_v63 = vsel %vm1092_vm1, %v1740_v62, %v1089_v8  ;;  %vm1106_vm3 = vweird.f32 %v1744_v9 }
 0x190   : > { %1747 = vrcp.f32 %v987_v31  ;;  %v1098_v27 = vsel %vm1095_vm2, %v1097_v48, %v1093_v63  ;;  %vm1107_vm5 = vmor %vm1105_vm4, %vm1106_vm3  ;;  %v1126_v19 = vand.u32 2147483648, %v987_v31  ;;  %vm1120_vm7 = vweird.f32 %v987_v31 }
 0x191   : > { %v1102_v30 = vsub.f32 1.0, %v1101_v40  ;;  %v1241_v44 = vmul.f32 %v1098_v27, %v2662_v6  ;;  %v1124_v58 = vand.u32 2147483647, %v987_v31 }
 0x192   : > { %v1127_v54 = vor.u32 1.1754944e-38, %v1126_v19 }
 0x193   : > { %v1103_v33 = vmul.f32 %v1744_v9, %v1102_v30  ;;  %v1257_v2 = vmul.f32 %v1241_v44, %v2672_v49  ;;  %v864_v29 = vpop.f32.mrf.mxu0  ;;  %vm1125_vm9 = vcmp.eq.f32.partialorder %v1124_v58, 8.507059e+37 }
 0x194   : > { %v2685_v28 = vpop.f32.mrf.mxu1 }
 0x195   : > { %v1746_v25 = vpop.eup %1745  ;;  %v1104_v16 = vadd.f32 %v1744_v9, %v1103_v33  ;;  %v1539_v38 = vmul.f32 -1.442695, %v2685_v28 }
 0x196   : > { %v1748_v61 = vpop.eup %1747  ;;  %v988_v41 = vadd.f32 1.0, %v1746_v25 }
 0x197   : > { %v1108_v36 = vsel %vm1107_vm5, %v1744_v9, %v1104_v16  ;;  %v1116_v12 = vmul.f32 %v1748_v61, %v987_v31  ;;  %1749 = vpow2.f32 %v1539_v38  ;;  %vm1121_vm0 = vweird.f32 %v1748_v61 }
 0x198   : > { %v1113_v59 = vsel %vm1110_vm6, %v1112_v55, %v1108_v36  ;;  %1751 = vrcp.f32 %v988_v41  ;;  %vm1122_vm8 = vmor %vm1120_vm7, %vm1121_vm0  ;;  %v1139_v13 = vand.u32 2147483647, %v988_v41  ;;  %v1141_v15 = vand.u32 2147483648, %v988_v41 }
 0x199   : > { %v1242_v10 = vmul.f32 %v1113_v59, %v2669_v56  ;;  %v1117_v39 = vsub.f32 1.0, %v1116_v12  ;;  %vm1135_vm11 = vweird.f32 %v988_v41 }
 0x19a   : > { %vm1140_vm13 = vcmp.eq.f32.partialorder %v1139_v13, 8.507059e+37  ;;  %v1142_v23 = vor.u32 1.1754944e-38, %v1141_v15 }
 0x19b   : > { %v1118_v24 = vmul.f32 %v1748_v61, %v1117_v39  ;;  %v1258_v3 = vmul.f32 %v1242_v10, %v859_v7  ;;  %v867_v53 = vpop.f32.mrf.mxu0 }
 0x19c   : > { %v2691_v5 = vpop.f32.mrf.mxu1 }
 0x19d   : > { %v1750_v11 = vpop.eup %1749  ;;  %v1119_v17 = vadd.f32 %v1748_v61, %v1118_v24  ;;  %v1540_v52 = vmul.f32 -1.442695, %v2691_v5  ;;  %v1270_v6 = vpack.c.bf16 %v1258_v3, %v1257_v2 }
 0x19e   : > { %v1752_v50 = vpop.eup %1751  ;;  %v989_v42 = vadd.f32 1.0, %v1750_v11 }
 0x19f   : > { %v1131_v56 = vmul.f32 %v1752_v50, %v988_v41  ;;  %1753 = vpow2.f32 %v1540_v52  ;;  %1362 = vmatmul.bf16.gmra.mxu2 %v1270_v6  ;;  %v1123_v49 = vsel %vm1122_vm8, %v1748_v61, %v1119_v17  ;;  %vm1136_vm10 = vweird.f32 %v1752_v50 }
 0x1a0   : > { %1755 = vrcp.f32 %v989_v42  ;;  %v1128_v1 = vsel %vm1125_vm9, %v1127_v54, %v1123_v49  ;;  %vm1137_vm12 = vmor %vm1135_vm11, %vm1136_vm10  ;;  %v1156_v48 = vand.u32 2147483648, %v989_v42  ;;  %vm1150_vm15 = vweird.f32 %v989_v42 }
 0x1a1   : > { %v1132_v57 = vsub.f32 1.0, %v1131_v56  ;;  %v1243_v7 = vmul.f32 %v1128_v1, %v2674_v14  ;;  %v1154_v32 = vand.u32 2147483647, %v989_v42 }
 0x1a3   : > { %v1133_v62 = vmul.f32 %v1752_v50, %v1132_v57  ;;  %v1259_v9 = vmul.f32 %v1243_v7, %v2683_v51  ;;  %v1157_v51 = vor.u32 1.1754944e-38, %v1156_v48  ;;  %v869_v25 = vpop.f32.mrf.mxu0  ;;  %vm1155_vm2 = vcmp.eq.f32.partialorder %v1154_v32, 8.507059e+37 }
 0x1a4   : > { %v2694_v0 = vpop.f32.mrf.mxu1 }
 0x1a5   : > { %v1754_v35 = vpop.eup %1753  ;;  %v1134_v47 = vadd.f32 %v1752_v50, %v1133_v62  ;;  %v1541_v21 = vmul.f32 -1.442695, %v2694_v0 }
 0x1a6   : > { %v1756_v22 = vpop.eup %1755  ;;  %v990_v20 = vadd.f32 1.0, %v1754_v35 }
 0x1a7   : > { %v1138_v37 = vsel %vm1137_vm12, %v1752_v50, %v1134_v47  ;;  %v1146_v60 = vmul.f32 %v1756_v22, %v989_v42  ;;  %1757 = vpow2.f32 %v1541_v21  ;;  %vm1151_vm14 = vweird.f32 %v1756_v22 }
 0x1a8   : > { %v1143_v43 = vsel %vm1140_vm13, %v1142_v23, %v1138_v37  ;;  %1759 = vrcp.f32 %v990_v20  ;;  %vm1152_vm1 = vmor %vm1150_vm15, %vm1151_vm14  ;;  %v1169_v16 = vand.u32 2147483647, %v990_v20  ;;  %v1171_v38 = vand.u32 2147483648, %v990_v20 }
 0x1a9   : > { %v1244_v8 = vmul.f32 %v1143_v43, %v2680_v18  ;;  %v1147_v4 = vsub.f32 1.0, %v1146_v60  ;;  %vm1165_vm4 = vweird.f32 %v990_v20 }
 0x1aa   : > { %vm1170_vm6 = vcmp.eq.f32.partialorder %v1169_v16, 8.507059e+37  ;;  %v1172_v10 = vor.u32 1.1754944e-38, %v1171_v38 }
 0x1ab   : > { %v1148_v26 = vmul.f32 %v1756_v22, %v1147_v4  ;;  %v1260_v46 = vmul.f32 %v1244_v8, %v864_v29  ;;  %v872_v29 = vpop.f32.mrf.mxu0 }
 0x1ac   : > { %v2700_v31 = vpop.f32.mrf.mxu1 }
 0x1ad   : > { %v1758_v45 = vpop.eup %1757  ;;  %v1149_v40 = vadd.f32 %v1756_v22, %v1148_v26  ;;  %v1542_v14 = vmul.f32 -1.442695, %v2700_v31  ;;  %v1271_v63 = vpack.c.bf16 %v1260_v46, %v1259_v9 }
 0x1ae   : > { %v1760_v30 = vpop.eup %1759  ;;  %v991_v34 = vadd.f32 1.0, %v1758_v45 }
 0x1af   : > { %v1161_v33 = vmul.f32 %v1760_v30, %v990_v20  ;;  %1761 = vpow2.f32 %v1542_v14  ;;  %1367 = vmatmul.bf16.gmra.mxu2 %v1271_v63  ;;  %v1153_v18 = vsel %vm1152_vm1, %v1756_v22, %v1149_v40  ;;  %vm1166_vm3 = vweird.f32 %v1760_v30 }
 0x1b0   : > { %1763 = vrcp.f32 %v991_v34  ;;  %v1158_v55 = vsel %vm1155_vm2, %v1157_v51, %v1153_v18  ;;  %vm1167_vm5 = vmor %vm1165_vm4, %vm1166_vm3  ;;  %v1186_v54 = vand.u32 2147483648, %v991_v34  ;;  %vm1180_vm7 = vweird.f32 %v991_v34 }
 0x1b1   : > { %v1162_v27 = vsub.f32 1.0, %v1161_v33  ;;  %v1245_v24 = vmul.f32 %v1158_v55, %v2685_v28  ;;  %v1184_v15 = vand.u32 2147483647, %v991_v34 }
 0x1b2   : > { %v1187_v35 = vor.u32 1.1754944e-38, %v1186_v54 }
 0x1b3   : > { %v1163_v61 = vmul.f32 %v1760_v30, %v1162_v27  ;;  %v1261_v50 = vmul.f32 %v1245_v24, %v867_v53  ;;  %vm1185_vm9 = vcmp.eq.f32.partialorder %v1184_v15, 8.507059e+37  ;;  %v874_v60 = vpop.f32.mrf.mxu0 }
 0x1b4   : > { %v2703_v41 = vpop.f32.mrf.mxu1 }
 0x1b5   : > { %v1762_v44 = vpop.eup %1761  ;;  %v1164_v36 = vadd.f32 %v1760_v30, %v1163_v61  ;;  %v1543_v12 = vmul.f32 -1.442695, %v2703_v41 }
 0x1b6   : > { %v1764_v59 = vpop.eup %1763  ;;  %v992_v39 = vadd.f32 1.0, %v1762_v44 }
 0x1b7   : > { %v1168_v2 = vsel %vm1167_vm5, %v1760_v30, %v1164_v36  ;;  %v1176_v3 = vmul.f32 %v1764_v59, %v991_v34  ;;  %1765 = vpow2.f32 %v1543_v12  ;;  %vm1181_vm0 = vweird.f32 %v1764_v59 }
 0x1b8   : > { %v1173_v11 = vsel %vm1170_vm6, %v1172_v10, %v1168_v2  ;;  %1767 = vrcp.f32 %v992_v39  ;;  %vm1182_vm8 = vmor %vm1180_vm7, %vm1181_vm0  ;;  %v1201_v47 = vand.u32 2147483648, %v992_v39  ;;  %v1199_v22 = vand.u32 2147483647, %v992_v39 }
 0x1b9   : > { %v1246_v17 = vmul.f32 %v1173_v11, %v2691_v5  ;;  %v1177_v52 = vsub.f32 1.0, %v1176_v3  ;;  %vm1195_vm11 = vweird.f32 %v992_v39 }
 0x1ba   : > { %v1202_v43 = vor.u32 1.1754944e-38, %v1201_v47  ;;  %vm1200_vm13 = vcmp.eq.f32.partialorder %v1199_v22, 8.507059e+37 }
 0x1bb   : > { %v1178_v6 = vmul.f32 %v1764_v59, %v1177_v52  ;;  %v1262_v19 = vmul.f32 %v1246_v17, %v869_v25 }
 0x1bc   : > { %v2708_v42 = vpop.f32.mrf.mxu1 }
 0x1bd   : > { %v1766_v58 = vpop.eup %1765  ;;  %v1179_v56 = vadd.f32 %v1764_v59, %v1178_v6  ;;  %v1544_v49 = vmul.f32 -1.442695, %v2708_v42  ;;  %v1272_v28 = vpack.c.bf16 %v1262_v19, %v1261_v50 }
 0x1be   : > { %v1768_v57 = vpop.eup %1767  ;;  %v993_v13 = vadd.f32 1.0, %v1766_v58 }
 0x1bf   : > { %v1191_v62 = vmul.f32 %v1768_v57, %v992_v39  ;;  %1769 = vpow2.f32 %v1544_v49  ;;  %1372 = vmatmul.bf16.gmra.mxu2 %v1272_v28  ;;  %v1183_v5 = vsel %vm1182_vm8, %v1764_v59, %v1179_v56  ;;  %vm1196_vm10 = vweird.f32 %v1768_v57 }
 0x1c0   : > { %1771 = vrcp.f32 %v993_v13  ;;  %v1188_v23 = vsel %vm1185_vm9, %v1187_v35, %v1183_v5  ;;  %vm1197_vm12 = vmor %vm1195_vm11, %vm1196_vm10  ;;  %v1216_v32 = vand.u32 2147483648, %v993_v13  ;;  %vm1210_vm15 = vweird.f32 %v993_v13 }
 0x1c1   : > { %v1192_v1 = vsub.f32 1.0, %v1191_v62  ;;  %v1247_v8 = vmul.f32 %v1188_v23, %v2694_v0  ;;  %v1214_v33 = vand.u32 2147483647, %v993_v13  ;;  %v877_v0 = vpop.f32.mrf.mxu0 }
 0x1c2   : > { %v1217_v25 = vor.u32 1.1754944e-38, %v1216_v32 }
 0x1c3   : > { %v1193_v21 = vmul.f32 %v1768_v57, %v1192_v1  ;;  %v1263_v14 = vmul.f32 %v1247_v8, %v872_v29  ;;  %vm1215_vm2 = vcmp.eq.f32.partialorder %v1214_v33, 8.507059e+37 }
 0x1c5   : > { %v1770_v20 = vpop.eup %1769  ;;  %v1194_v7 = vadd.f32 %v1768_v57, %v1193_v21 }
 0x1c6   : > { %v1772_v37 = vpop.eup %1771  ;;  %v994_v53 = vadd.f32 1.0, %v1770_v20 }
 0x1c7   : > { %v1198_v4 = vsel %vm1197_vm12, %v1768_v57, %v1194_v7  ;;  %v1206_v26 = vmul.f32 %v1772_v37, %v993_v13  ;;  %vm1211_vm14 = vweird.f32 %v1772_v37 }
 0x1c8   : > { %v1203_v9 = vsel %vm1200_vm13, %v1202_v43, %v1198_v4  ;;  %1773 = vrcp.f32 %v994_v53  ;;  %vm1212_vm1 = vmor %vm1210_vm15, %vm1211_vm14  ;;  %v1231_v16 = vand.u32 2147483648, %v994_v53  ;;  %v1229_v38 = vand.u32 2147483647, %v994_v53 }
 0x1c9   : > { %v1248_v46 = vmul.f32 %v1203_v9, %v2700_v31  ;;  %v1207_v45 = vsub.f32 1.0, %v1206_v26  ;;  %vm1225_vm4 = vweird.f32 %v994_v53  ;;  %v879_v39 = vpop.f32.mrf.mxu0 }
 0x1ca   : > { %v1232_v44 = vor.u32 1.1754944e-38, %v1231_v16  ;;  %vm1230_vm6 = vcmp.eq.f32.partialorder %v1229_v38, 8.507059e+37 }
 0x1cb   : > { %v1208_v40 = vmul.f32 %v1772_v37, %v1207_v45  ;;  %v1264_v63 = vmul.f32 %v1248_v46, %v874_v60 }
 0x1cd   : > { %v1209_v30 = vadd.f32 %v1772_v37, %v1208_v40  ;;  %v1273_v48 = vpack.c.bf16 %v1264_v63, %v1263_v14 }
 0x1ce   : > { %v1774_v34 = vpop.eup %1773 }
 0x1cf   : > { %v1221_v18 = vmul.f32 %v1774_v34, %v994_v53  ;;  %1377 = vmatmul.bf16.vlgmr.msra.gmra.mxu3 %v1273_v48  ;;  %v1213_v27 = vsel %vm1212_vm1, %v1772_v37, %v1209_v30  ;;  %vm1226_vm3 = vweird.f32 %v1774_v34 }
 0x1d0   : > { %v1218_v61 = vsel %vm1215_vm2, %v1217_v25, %v1213_v27  ;;  %vm1227_vm5 = vmor %vm1225_vm4, %vm1226_vm3 }
 0x1d1   : > { %v1222_v51 = vsub.f32 1.0, %v1221_v18  ;;  %v1249_v36 = vmul.f32 %v1218_v61, %v2703_v41 }
 0x1d3   : > { %v1223_v31 = vmul.f32 %v1774_v34, %v1222_v51  ;;  %v1265_v2 = vmul.f32 %v1249_v36, %v877_v0 }
 0x1d5   : > { %v1224_v55 = vadd.f32 %v1774_v34, %v1223_v31 }
 0x1d7   : > { %v1228_v12 = vsel %vm1227_vm5, %v1774_v34, %v1224_v55 }
 0x1d8   : > { %v1233_v59 = vsel %vm1230_vm6, %v1232_v44, %v1228_v12 }
 0x1d9   : > { %v1250_v10 = vmul.f32 %v1233_v59, %v2708_v42 }
 0x1db   : > { %v1266_v24 = vmul.f32 %v1250_v10, %v879_v39 }
 0x1dd   : > { %v1274_v3 = vpack.c.bf16 %v1266_v24, %v1265_v2 }
 0x1df   : > { %1382 = vmatmul.bf16.gmra.mxu3 %v1274_v3 }
 0x1f2   : > { %v1348_v11 = vpop.f32.mrf.mxu2 }
 0x1f3   : > { %1388 = vst [vmem:[%s2718_s23] sm:$0xff] %v1348_v11 }
 0x1fa   : > { %v1350_v41 = vpop.f32.mrf.mxu2 }
 0x1fb   : > { %1389 = vst [vmem:[%s2718_s23 + $0x8] sm:$0xff] %v1350_v41 }
 0x202   : > { %v1353_v17 = vpop.f32.mrf.mxu2 }
 0x203   : > { %1390 = vst [vmem:[%s2718_s23 + $0x10] sm:$0xff] %v1353_v17 }
 0x20a   : > { %v1355_v52 = vpop.f32.mrf.mxu2 }
 0x20b   : > { %1391 = vst [vmem:[%s2718_s23 + $0x18] sm:$0xff] %v1355_v52 }
 0x212   : > { %v1358_v6 = vpop.f32.mrf.mxu2 }
 0x213   : > { %1392 = vst [vmem:[%s2718_s23 + $0x20] sm:$0xff] %v1358_v6 }
 0x21a   : > { %v1360_v50 = vpop.f32.mrf.mxu2 }
 0x21b   : > { %1393 = vst [vmem:[%s2718_s23 + $0x28] sm:$0xff] %v1360_v50 }
 0x222   : > { %v1363_v19 = vpop.f32.mrf.mxu2 }
 0x223   : > { %1394 = vst [vmem:[%s2718_s23 + $0x30] sm:$0xff] %v1363_v19 }
 0x22a   : > { %v1365_v29 = vpop.f32.mrf.mxu2 }
 0x22b   : > { %1395 = vst [vmem:[%s2718_s23 + $0x38] sm:$0xff] %v1365_v29 }
 0x232   : > { %v1368_v42 = vpop.f32.mrf.mxu2 }
 0x233   : > { %1396 = vst [vmem:[%s2718_s23 + $0x40] sm:$0xff] %v1368_v42 }
 0x23a   : > { %v1370_v58 = vpop.f32.mrf.mxu2 }
 0x23b   : > { %1397 = vst [vmem:[%s2718_s23 + $0x48] sm:$0xff] %v1370_v58 }
 0x242   : > { %v1373_v56 = vpop.f32.mrf.mxu2 }
 0x243   : > { %1398 = vst [vmem:[%s2718_s23 + $0x50] sm:$0xff] %v1373_v56 }
 0x24a   : > { %v1375_v49 = vpop.f32.mrf.mxu2 }
 0x24b   : > { %1399 = vst [vmem:[%s2718_s23 + $0x58] sm:$0xff] %v1375_v49 }
 0x252   : > { %v1378_v28 = vpop.f32.mrf.mxu3 }
 0x253   : > { %1400 = vst [vmem:[%s2718_s23 + $0x60] sm:$0xff] %v1378_v28 }
 0x25a   : > { %v1380_v57 = vpop.f32.mrf.mxu3 }
 0x25b   : > { %1401 = vst [vmem:[%s2718_s23 + $0x68] sm:$0xff] %v1380_v57 }
 0x262   : > { %v1383_v54 = vpop.f32.mrf.mxu3 }
 0x263   : > { %1402 = vst [vmem:[%s2718_s23 + $0x70] sm:$0xff] %v1383_v54 }
 0x26a   : > { %v1385_v13 = vpop.f32.mrf.mxu3 }
 0x26b   : > { %1403 = vst [vmem:[%s2718_s23 + $0x78] sm:$0xff] %v1385_v13 }
 0x26c   : > { %1808 = shalt.err (!%p1805_p3)
}
 0x26d   : > { %s1845_s14 = smov 128   ;;  %s1846_s20 = smov 8  }
 0x26e   : > { %1605 = dma.vmem_to_hbm [thread:$0]  (%p1910_p5), %s1418_s30, 2048, %s1420_s6, %s1405_s7, %s1845_s14, %s1845_s14, %s1846_s20  }
 0x26f PF: > { %p1611_p4 = scmp.ge.s32.totalorder %s1843_s18, 2  ;;  %s1434_s22 = sand.u32 1, %s1831_s15  }
 0x270   : > { %s1435_s23 = scalar_lea.sflag [#allocation3], %s1434_s22 }
 0x271   : > { %p1608_p7 = pnand %p1611_p4, %p1914_p6 }
 0x273   : > { %p1609_p8 = pneg %p1608_p7 }
 0x275   : > { %1826 = dma.done.wait (%p1609_p8), %s1435_s23, 2048  }
 0x276   : > { %1828 = vsyncadd (%p1609_p8), %s1435_s23, 4294965248  ;;  %p14_p9 = scmp.ge.s32.totalorder %s1897_s21, 4   ;;  %s2801_s15 = smov %s1835_s16 }
 0x277   : > { %s2802_s16 = smov %s1839_s17  ;;  %s2803_s17 = smov %s1908_s24 }
 0x278   : > { %s2804_s18 = smov %s1897_s21  ;;  %16 = sbr.rel (!%p14_p9) target bundleno = 3 (0x3), region = 71 }
 0x27d   :  { %1441 = vsyncpa [#allocation3], 1 }
 0x27e   :  { %1443 = vsyncpa [#allocation3 + $0x1], 1 }

</bundles_post_ra>
